<compile_context>
chip_gen: v6e
topology: v6e:2x2x1
jax: 0.10.0
libtpu: 0.0.40
codegen_flags: <defaults>
</compile_context>

<pallas_src>
import jax
import jax.numpy as jnp
from jax.experimental import pallas as pl
from jax.experimental.pallas import tpu as pltpu

# ----------------------------- config (small, deterministic) -----------------
BSZ = 2
MAX_POST = 4
MAX_LEN = 8
D_MODEL = 128          # stands in for 768 (the forward hardcodes d_model there)
VOCAB = 64
PAD = 0
LIWC_NUM = 8
MAX_NODE = 16          # graph_ids nodes (first LIWC_NUM are LIWC nodes)
MAX_IDX = 4            # max word indices per graph node
NUM_LABELS = 4
N_BERT_LAYERS = 4      # simplified encoder depth (>= 3 needed for [:, -3:])
N_NODES = MAX_POST + MAX_NODE   # 20 real nodes fed to the GAT
N_PAD = 24             # nodes padded to a multiple of 8 for aligned GAT tiles
HEAD_PAD = 128         # lane-dense classifier output slab (real logits = 8)


# ----------------------------- Pallas kernels --------------------------------
def encoder_kernel(lw_ref, tok_ref, am_ref, wc_tok_ref, wc_mask_ref,
                   pooler_w_ref, pooler_b_ref, layer_w_ref, layer_b_ref,
                   sem_ref, post_ref, wc_ref):
    """Fused per-batch encoder: pooling + pooler + CLS layers + layer mix + wc mean."""
    # ---- post-token masked mean pooling + BERT pooler (tanh affine) ----
    tok = tok_ref[0]                                        # (P, L, D) f32
    am = am_ref[0]                                          # (P, L)
    pooled = jnp.sum(tok * am[:, :, None], axis=1)          # (P, D)
    cnt = jnp.sum(am, axis=1, keepdims=True)                # (P, 1)
    pooled = pooled * (1.0 / (cnt + 1e-8))
    sem_ref[0] = jnp.tanh(
        jnp.dot(pooled.astype(jnp.bfloat16), pooler_w_ref[...],
                preferred_element_type=jnp.float32) + pooler_b_ref[...])

    # ---- per-layer CLS transforms; softmax-weighted mix of the last 3 layers ----
    cls = tok[:, 0, :]                                      # layer-0 CLS (P, D)
    acc = jnp.zeros_like(cls)
    for l in range(N_BERT_LAYERS):                          # unrolled, cls stays in vregs
        cls = jnp.tanh(
            jnp.dot(cls.astype(jnp.bfloat16), layer_w_ref[l],
                    preferred_element_type=jnp.float32) + layer_b_ref[l])
        if l >= N_BERT_LAYERS - 3:
            acc = acc + lw_ref[l - (N_BERT_LAYERS - 3)] * cls
    post_ref[0] = acc                                       # einsum('k,bknd->bnd') folded in

    # ---- word-category node embeddings: masked mean over idx slots ----
    wt = wc_tok_ref[0]                                      # (MN, MI, D)
    wm = wc_mask_ref[0]                                     # (MN, MI)
    ws = jnp.sum(wt * wm[:, :, None], axis=1)               # (MN, D)
    wcnt = jnp.sum(wm, axis=1, keepdims=True)
    wc_ref[0] = ws * (1.0 / (wcnt + 1e-8))


def encoder(layer_weight, tok_emb, attn_mask, wc_tok, wc_mask,
            pooler_w, pooler_b, layer_w, layer_b):
    B = tok_emb.shape[0]
    out_shapes = (
        jax.ShapeDtypeStruct((B, MAX_POST, D_MODEL), jnp.float32),   # last_sematic_rep
        jax.ShapeDtypeStruct((B, MAX_POST, D_MODEL), jnp.float32),   # post_emb (layer mix)
        jax.ShapeDtypeStruct((B, MAX_NODE, D_MODEL), jnp.float32),   # wc_emb
    )
    return pl.pallas_call(
        encoder_kernel,
        out_shape=out_shapes,
        grid=(B,),
        in_specs=[
            pl.BlockSpec(memory_space=pltpu.MemorySpace.SMEM),                      # layer weights (3,)
            pl.BlockSpec((1, MAX_POST, MAX_LEN, D_MODEL), lambda b: (b, 0, 0, 0)),
            pl.BlockSpec((1, MAX_POST, MAX_LEN), lambda b: (b, 0, 0)),
            pl.BlockSpec((1, MAX_NODE, MAX_IDX, D_MODEL), lambda b: (b, 0, 0, 0)),
            pl.BlockSpec((1, MAX_NODE, MAX_IDX), lambda b: (b, 0, 0)),
            pl.BlockSpec((D_MODEL, D_MODEL), lambda b: (0, 0)),
            pl.BlockSpec((1, D_MODEL), lambda b: (0, 0)),
            pl.BlockSpec((N_BERT_LAYERS, D_MODEL, D_MODEL), lambda b: (0, 0, 0)),
            pl.BlockSpec((N_BERT_LAYERS, 1, D_MODEL), lambda b: (0, 0, 0)),
        ],
        out_specs=(
            pl.BlockSpec((1, MAX_POST, D_MODEL), lambda b: (b, 0, 0)),
            pl.BlockSpec((1, MAX_POST, D_MODEL), lambda b: (b, 0, 0)),
            pl.BlockSpec((1, MAX_NODE, D_MODEL), lambda b: (b, 0, 0)),
        ),
        compiler_params=pltpu.CompilerParams(dimension_semantics=("parallel",)),
    )(layer_weight.astype(jnp.float32),
      tok_emb.astype(jnp.float32),
      attn_mask.astype(jnp.float32),
      wc_tok.astype(jnp.float32),
      wc_mask.astype(jnp.float32),
      pooler_w.astype(jnp.bfloat16),
      pooler_b.reshape(1, D_MODEL).astype(jnp.float32),
      layer_w.astype(jnp.bfloat16),
      layer_b.reshape(N_BERT_LAYERS, 1, D_MODEL).astype(jnp.float32))


def gat_head_kernel(x_ref, adj_ref, nmask_ref, wqkv_ref, clsw_ref, clsb_ref, out_ref):
    # TODO(synk): Flow_GAT internals are not provided; this is a single-head
    #             adjacency-masked scaled-dot-product attention with residual.
    x = x_ref[0]                                            # (N_PAD, D) f32
    qkv = jnp.dot(x.astype(jnp.bfloat16), wqkv_ref[...],
                  preferred_element_type=jnp.float32)       # fused QKV: (N_PAD, 3D)
    q = qkv[:, :D_MODEL].astype(jnp.bfloat16)
    k = qkv[:, D_MODEL:2 * D_MODEL].astype(jnp.bfloat16)
    v = qkv[:, 2 * D_MODEL:].astype(jnp.bfloat16)
    scale = 1.0 / jnp.sqrt(jnp.float32(D_MODEL))
    s = jax.lax.dot_general(q, k, (((1,), (1,)), ((), ())),
                            preferred_element_type=jnp.float32) * scale   # (N_PAD, N_PAD)
    adj = adj_ref[0]
    s = jnp.where(adj > 0, s, jnp.float32(-1e30))           # pad cols have adj == 0
    s = s - jnp.max(s, axis=-1, keepdims=True)
    p = jnp.exp(s)
    p = p * pl.reciprocal(jnp.sum(p, axis=-1, keepdims=True) + 1e-8, approx=True)
    new_x = x + jnp.dot(p.astype(jnp.bfloat16), v,
                        preferred_element_type=jnp.float32)               # (N_PAD, D)

    # masked mean over post nodes (mask is zero beyond the first MAX_POST nodes).
    m = nmask_ref[0]                                        # (1, N_PAD)
    psum = jax.lax.dot_general(m, new_x, (((1,), (0,)), ((), ())),
                               preferred_element_type=jnp.float32)        # (1, D)
    cnt = jnp.sum(m, axis=-1, keepdims=True)                # (1, 1)
    psych = psum * (1.0 / (cnt + 1e-8))

    # lane-dense classifier slab: (1, 128), real logits occupy the first 8 lanes.
    out_ref[0] = (jnp.dot(psych.astype(jnp.bfloat16), clsw_ref[...],
                          preferred_element_type=jnp.float32) + clsb_ref[...])


def gat_head(nodes_emb, adj, node_mask, wqkv, cls_w, cls_b):
    B = nodes_emb.shape[0]
    return pl.pallas_call(
        gat_head_kernel,
        out_shape=jax.ShapeDtypeStruct((B, 1, HEAD_PAD), jnp.float32),
        grid=(B,),
        in_specs=[
            pl.BlockSpec((1, N_PAD, D_MODEL), lambda b: (b, 0, 0)),
            pl.BlockSpec((1, N_PAD, N_PAD), lambda b: (b, 0, 0)),
            pl.BlockSpec((1, 1, N_PAD), lambda b: (b, 0, 0)),
            pl.BlockSpec((D_MODEL, 3 * D_MODEL), lambda b: (0, 0)),
            pl.BlockSpec((D_MODEL, HEAD_PAD), lambda b: (0, 0)),
            pl.BlockSpec((1, HEAD_PAD), lambda b: (0, 0)),
        ],
        out_specs=pl.BlockSpec((1, 1, HEAD_PAD), lambda b: (b, 0, 0)),
        compiler_params=pltpu.CompilerParams(dimension_semantics=("parallel",)),
    )(nodes_emb.astype(jnp.float32), adj.astype(jnp.float32),
      node_mask.astype(jnp.float32), wqkv, cls_w, cls_b)


# ----------------------------- model ------------------------------------------
def init_params(key):
    ks = jax.random.split(key, 16)
    p = {
        "word_emb": jax.random.normal(ks[0], (VOCAB, D_MODEL), jnp.float32) * 0.02,
        "pooler_w": jax.random.normal(ks[1], (D_MODEL, D_MODEL), jnp.float32) * 0.02,
        "pooler_b": jnp.zeros((D_MODEL,), jnp.float32),
        "layer_w": jax.random.normal(ks[2], (N_BERT_LAYERS, D_MODEL, D_MODEL),
                                     jnp.float32) * 0.02,
        "layer_b": jnp.zeros((N_BERT_LAYERS, D_MODEL), jnp.float32),
        "liwc_emb": jax.random.normal(ks[3], (LIWC_NUM, D_MODEL), jnp.float32) * 0.02,
        "layer_param": jax.random.uniform(ks[4], (3,), jnp.float32),   # torch.rand(3)
        "gat_wq": jax.random.normal(ks[5], (D_MODEL, D_MODEL), jnp.float32) * 0.02,
        "gat_wk": jax.random.normal(ks[6], (D_MODEL, D_MODEL), jnp.float32) * 0.02,
        "gat_wv": jax.random.normal(ks[7], (D_MODEL, D_MODEL), jnp.float32) * 0.02,
        # NUM_LABELS independent Linear(d_model, 2) heads, concatenated.
        "cls_w": jax.random.normal(ks[8], (D_MODEL, NUM_LABELS * 2), jnp.float32) * 0.02,
        "cls_b": jnp.zeros((NUM_LABELS * 2,), jnp.float32),
    }
    return p


def trignet_forward(params, posts_ids, posts_mask, attn_mask, graph_ids,
                    graph_adj, labels):
    bsz = posts_ids.shape[0]

    # ---------------- glue: embedding gathers + mask prep ----------------
    tok_emb = params["word_emb"][posts_ids]                     # (B, P, L, D)
    wc_tok = params["word_emb"][graph_ids]                      # (B, MN, MI, D)
    wc_mask = (graph_ids != PAD).astype(jnp.float32)            # (B, MN, MI)
    layer_weight = jax.nn.softmax(params["layer_param"])        # (3,)

    # ---------------- fused encoder kernel ----------------
    last_sematic_rep, post_emb, wc_emb = encoder(
        layer_weight, tok_emb, attn_mask, wc_tok, wc_mask,
        params["pooler_w"], params["pooler_b"],
        params["layer_w"], params["layer_b"])

    # ---------------- assemble graph nodes (glue), pad to aligned N_PAD ----------------
    liwc_emb = jnp.broadcast_to(params["liwc_emb"][None],
                                (bsz, LIWC_NUM, D_MODEL))       # embedding of range(liwc_num)
    word_emb = wc_emb[:, LIWC_NUM:, :]                          # layer-0 word nodes
    nodes_emb = jnp.concatenate([post_emb, liwc_emb, word_emb], axis=1)   # (B, 20, D)
    nodes_pad = jnp.pad(nodes_emb, ((0, 0), (0, N_PAD - N_NODES), (0, 0)))
    adj_pad = jnp.pad(graph_adj.astype(jnp.float32),
                      ((0, 0), (0, N_PAD - N_NODES), (0, N_PAD - N_NODES)))
    node_mask = jnp.pad(posts_mask.astype(jnp.float32),
                        ((0, 0), (0, N_PAD - MAX_POST)))[:, None, :]      # (B, 1, N_PAD)

    wqkv = jnp.concatenate(
        [params["gat_wq"], params["gat_wk"], params["gat_wv"]],
        axis=1).astype(jnp.bfloat16)                                       # (D, 3D)
    cls_w = jnp.pad(params["cls_w"],
                    ((0, 0), (0, HEAD_PAD - NUM_LABELS * 2))).astype(jnp.bfloat16)
    cls_b = jnp.pad(params["cls_b"],
                    (0, HEAD_PAD - NUM_LABELS * 2)).reshape(1, HEAD_PAD)

    # ---------------- fused GAT + final pooling + classifier head ----------------
    logits_slab = gat_head(nodes_pad, adj_pad, node_mask, wqkv, cls_w, cls_b)  # (B,1,128)
    logits = logits_slab[:, 0, :NUM_LABELS * 2].reshape(bsz, NUM_LABELS, 2)

    # ---------------- loss / pred / acc (tiny glue) ----------------
    logits_flat = logits.reshape(-1, 2)
    labels_flat = labels.reshape(-1)
    m = jnp.max(logits_flat, axis=-1, keepdims=True)
    logz = (m[:, 0] + jnp.log(jnp.sum(jnp.exp(logits_flat - m), axis=-1)))
    ll = jnp.take_along_axis(logits_flat, labels_flat[:, None], axis=-1)[:, 0]
    loss = jnp.sum(logz - ll)                                   # cross_entropy(sum)
    pred = jnp.argmax(logits_flat, axis=-1).reshape(-1, NUM_LABELS)
    acc = jnp.sum((pred == labels).astype(jnp.float32))

    return {"loss": loss, "pred": pred, "acc": acc,
            "last_sematic_rep": last_sematic_rep}


# ----------------------------- main -------------------------------------------
if __name__ == "__main__":
    key = jax.random.PRNGKey(0)
    kp, k1, k2, k3, k4, k5, k6 = jax.random.split(key, 7)

    params = init_params(kp)

    posts_ids = jax.random.randint(k1, (BSZ, MAX_POST, MAX_LEN), 1, VOCAB, jnp.int32)
    attn_mask = (jax.random.uniform(k2, (BSZ, MAX_POST, MAX_LEN)) > 0.3).astype(jnp.float32)
    attn_mask = attn_mask.at[..., 0].set(1.0)                   # CLS always attended
    posts_mask = (jax.random.uniform(k3, (BSZ, MAX_POST)) > 0.3).astype(jnp.float32)
    posts_mask = posts_mask.at[:, 0].set(1.0)
    graph_ids = jax.random.randint(k4, (BSZ, MAX_NODE, MAX_IDX), 0, VOCAB, jnp.int32)
    adj = (jax.random.uniform(k5, (BSZ, N_NODES, N_NODES)) > 0.5).astype(jnp.float32)
    graph_adj = jnp.clip(adj + jnp.eye(N_NODES, dtype=jnp.float32)[None], 0.0, 1.0)
    labels = jax.random.randint(k6, (BSZ, NUM_LABELS), 0, 2, jnp.int32)

    fwd = jax.jit(trignet_forward)
    out = fwd(params, posts_ids, posts_mask, attn_mask, graph_ids, graph_adj, labels)
    jax.block_until_ready(out["loss"])
    jax.block_until_ready(out["pred"])
    jax.block_until_ready(out["acc"])
    print("KERNEL_OK")
</pallas_src>

<mosaic_0001>
module attributes {stable_mosaic.version = 11 : i64} {
  func.func @gat_head_kernel(%arg0: i32, %arg1: memref<1x24x128xf32, #tpu.memory_space<vmem>>, %arg2: memref<1x24x24xf32, #tpu.memory_space<vmem>>, %arg3: memref<1x1x24xf32, #tpu.memory_space<vmem>>, %arg4: memref<128x384xbf16, #tpu.memory_space<vmem>>, %arg5: memref<128x128xbf16, #tpu.memory_space<vmem>>, %arg6: memref<1x128xf32, #tpu.memory_space<vmem>>, %arg7: memref<1x1x128xf32, #tpu.memory_space<vmem>>) attributes {dimension_semantics = [#tpu.dimension_semantics<parallel>], iteration_bounds = array<i64: 2>, scalar_prefetch = 0 : i64, scratch_operands = 0 : i64, tpu.core_type = #tpu.core_type<tc>, window_params = [{transform_indices = @transform_0, window_bounds = array<i64: 1, 24, 128>}, {transform_indices = @transform_1, window_bounds = array<i64: 1, 24, 24>}, {transform_indices = @transform_2, window_bounds = array<i64: 1, 1, 24>}, {pipeline_mode = #tpu.pipeline_mode<synchronous>, transform_indices = @transform_3, window_bounds = array<i64: 128, 384>}, {pipeline_mode = #tpu.pipeline_mode<synchronous>, transform_indices = @transform_4, window_bounds = array<i64: 128, 128>}, {pipeline_mode = #tpu.pipeline_mode<synchronous>, transform_indices = @transform_5, window_bounds = array<i64: 1, 128>}, {transform_indices = @transform_6, window_bounds = array<i64: 1, 1, 128>}]} {
    %c0 = arith.constant 0 : index
    %c0_0 = arith.constant 0 : index
    %c0_1 = arith.constant 0 : index
    %0 = vector.load %arg1[%c0, %c0_0, %c0_1] : memref<1x24x128xf32, #tpu.memory_space<vmem>>, vector<1x24x128xf32>
    %1 = vector.shape_cast %0 : vector<1x24x128xf32> to vector<24x128xf32>
    %2 = arith.truncf %1 : vector<24x128xf32> to vector<24x128xbf16>
    %c0_2 = arith.constant 0 : index
    %c0_3 = arith.constant 0 : index
    %3 = vector.load %arg4[%c0_2, %c0_3] : memref<128x384xbf16, #tpu.memory_space<vmem>>, vector<128x384xbf16>
    %cst = arith.constant dense<0.000000e+00> : vector<24x384xf32>
    %4 = tpu.matmul %2, %3, %cst {dimension_numbers = #tpu.dot_dimension_numbers<[1], [0], [0], [1], [0, 0, 1, 1], [], []>} : vector<24x128xbf16>, vector<128x384xbf16>, vector<24x384xf32> -> vector<24x384xf32>
    %5 = vector.extract_strided_slice %4 {offsets = [0, 0], sizes = [24, 128], strides = [1, 1]} : vector<24x384xf32> to vector<24x128xf32>
    %6 = arith.truncf %5 : vector<24x128xf32> to vector<24x128xbf16>
    %7 = vector.extract_strided_slice %4 {offsets = [0, 128], sizes = [24, 128], strides = [1, 1]} : vector<24x384xf32> to vector<24x128xf32>
    %8 = arith.truncf %7 : vector<24x128xf32> to vector<24x128xbf16>
    %9 = vector.extract_strided_slice %4 {offsets = [0, 256], sizes = [24, 128], strides = [1, 1]} : vector<24x384xf32> to vector<24x128xf32>
    %10 = arith.truncf %9 : vector<24x128xf32> to vector<24x128xbf16>
    %cst_4 = arith.constant 1.280000e+02 : f32
    %11 = math.sqrt %cst_4 : f32
    %cst_5 = arith.constant 1.000000e+00 : f32
    %12 = arith.divf %cst_5, %11 : f32
    %cst_6 = arith.constant dense<0.000000e+00> : vector<24x24xf32>
    %13 = tpu.matmul %6, %8, %cst_6 {dimension_numbers = #tpu.dot_dimension_numbers<[1], [1], [0], [0], [0, 0, 1, 0], [], []>} : vector<24x128xbf16>, vector<24x128xbf16>, vector<24x24xf32> -> vector<24x24xf32>
    %14 = vector.broadcast %12 : f32 to vector<24x24xf32>
    %15 = arith.mulf %13, %14 : vector<24x24xf32>
    %c0_7 = arith.constant 0 : index
    %c0_8 = arith.constant 0 : index
    %c0_9 = arith.constant 0 : index
    %16 = vector.load %arg2[%c0_7, %c0_8, %c0_9] : memref<1x24x24xf32, #tpu.memory_space<vmem>>, vector<1x24x24xf32>
    %17 = vector.shape_cast %16 : vector<1x24x24xf32> to vector<24x24xf32>
    %cst_10 = arith.constant 0.000000e+00 : f32
    %18 = vector.broadcast %cst_10 : f32 to vector<24x24xf32>
    %19 = arith.cmpf ogt, %17, %18 : vector<24x24xf32>
    %cst_11 = arith.constant -1.000000e+30 : f32
    %20 = vector.broadcast %cst_11 : f32 to vector<24x24xf32>
    %21 = arith.select %19, %15, %20 : vector<24x24xi1>, vector<24x24xf32>
    %cst_12 = arith.constant dense<0xFF800000> : vector<24xf32>
    %22 = vector.multi_reduction <maximumf>, %21, %cst_12 [1] : vector<24x24xf32> to vector<24xf32>
    %23 = vector.shape_cast %22 : vector<24xf32> to vector<24x1xf32>
    %24 = vector.broadcast %23 : vector<24x1xf32> to vector<24x24xf32>
    %25 = arith.subf %21, %24 : vector<24x24xf32>
    %26 = math.exp %25 : vector<24x24xf32>
    %cst_13 = arith.constant dense<0.000000e+00> : vector<24xf32>
    %27 = vector.multi_reduction <add>, %26, %cst_13 [1] : vector<24x24xf32> to vector<24xf32>
    %28 = vector.shape_cast %27 : vector<24xf32> to vector<24x1xf32>
    %cst_14 = arith.constant 9.99999993E-9 : f32
    %29 = vector.broadcast %cst_14 : f32 to vector<24x1xf32>
    %30 = arith.addf %28, %29 : vector<24x1xf32>
    %31 = tpu.reciprocal %30 {approx = true} : vector<24x1xf32> -> vector<24x1xf32>
    %32 = vector.broadcast %31 : vector<24x1xf32> to vector<24x24xf32>
    %33 = arith.mulf %26, %32 : vector<24x24xf32>
    %34 = arith.truncf %33 : vector<24x24xf32> to vector<24x24xbf16>
    %cst_15 = arith.constant dense<0.000000e+00> : vector<24x128xf32>
    %35 = tpu.matmul %34, %10, %cst_15 {dimension_numbers = #tpu.dot_dimension_numbers<[1], [0], [0], [1], [0, 0, 1, 1], [], []>} : vector<24x24xbf16>, vector<24x128xbf16>, vector<24x128xf32> -> vector<24x128xf32>
    %36 = arith.addf %1, %35 : vector<24x128xf32>
    %c0_16 = arith.constant 0 : index
    %c0_17 = arith.constant 0 : index
    %c0_18 = arith.constant 0 : index
    %37 = vector.load %arg3[%c0_16, %c0_17, %c0_18] : memref<1x1x24xf32, #tpu.memory_space<vmem>>, vector<1x1x24xf32>
    %38 = vector.shape_cast %37 : vector<1x1x24xf32> to vector<1x24xf32>
    %cst_19 = arith.constant dense<0.000000e+00> : vector<1x128xf32>
    %39 = tpu.matmul %38, %36, %cst_19 {dimension_numbers = #tpu.dot_dimension_numbers<[1], [0], [0], [1], [0, 0, 1, 1], [], []>} : vector<1x24xf32>, vector<24x128xf32>, vector<1x128xf32> -> vector<1x128xf32>
    %cst_20 = arith.constant dense<0.000000e+00> : vector<1xf32>
    %40 = vector.multi_reduction <add>, %38, %cst_20 [1] : vector<1x24xf32> to vector<1xf32>
    %41 = vector.shape_cast %40 : vector<1xf32> to vector<1x1xf32>
    %cst_21 = arith.constant 9.99999993E-9 : f32
    %42 = vector.broadcast %cst_21 : f32 to vector<1x1xf32>
    %43 = arith.addf %41, %42 : vector<1x1xf32>
    %cst_22 = arith.constant 1.000000e+00 : f32
    %44 = vector.broadcast %cst_22 : f32 to vector<1x1xf32>
    %45 = arith.divf %44, %43 : vector<1x1xf32>
    %46 = vector.broadcast %45 : vector<1x1xf32> to vector<1x128xf32>
    %47 = arith.mulf %39, %46 : vector<1x128xf32>
    %48 = arith.truncf %47 : vector<1x128xf32> to vector<1x128xbf16>
    %c0_23 = arith.constant 0 : index
    %c0_24 = arith.constant 0 : index
    %49 = vector.load %arg5[%c0_23, %c0_24] : memref<128x128xbf16, #tpu.memory_space<vmem>>, vector<128x128xbf16>
    %cst_25 = arith.constant dense<0.000000e+00> : vector<1x128xf32>
    %50 = tpu.matmul %48, %49, %cst_25 {dimension_numbers = #tpu.dot_dimension_numbers<[1], [0], [0], [1], [0, 0, 1, 1], [], []>} : vector<1x128xbf16>, vector<128x128xbf16>, vector<1x128xf32> -> vector<1x128xf32>
    %c0_26 = arith.constant 0 : index
    %c0_27 = arith.constant 0 : index
    %51 = vector.load %arg6[%c0_26, %c0_27] : memref<1x128xf32, #tpu.memory_space<vmem>>, vector<1x128xf32>
    %52 = arith.addf %50, %51 : vector<1x128xf32>
    %c0_28 = arith.constant 0 : index
    %c0_29 = arith.constant 0 : index
    %c0_30 = arith.constant 0 : index
    %53 = vector.load %arg7[%c0_28, %c0_29, %c0_30] : memref<1x1x128xf32, #tpu.memory_space<vmem>>, vector<1x1x128xf32>
    %54 = vector.shape_cast %53 : vector<1x1x128xf32> to vector<1x128xf32>
    %55 = vector.shape_cast %52 : vector<1x128xf32> to vector<1x1x128xf32>
    tpu.vector_store %arg7[%c0_28, %c0_29, %c0_30], %55 {strides = array<i32>} : memref<1x1x128xf32, #tpu.memory_space<vmem>>, vector<1x1x128xf32>,
    return
  }
  func.func @transform_0(%arg0: i32) -> (i32, i32, i32) {
    %c0_i32 = arith.constant 0 : i32
    %c0_i32_0 = arith.constant 0 : i32
    %c0_i32_1 = arith.constant 0 : i32
    return %arg0, %c0_i32, %c0_i32_0 : i32, i32, i32
  }
  func.func @transform_1(%arg0: i32) -> (i32, i32, i32) {
    %c0_i32 = arith.constant 0 : i32
    %c0_i32_0 = arith.constant 0 : i32
    %c0_i32_1 = arith.constant 0 : i32
    return %arg0, %c0_i32, %c0_i32_0 : i32, i32, i32
  }
  func.func @transform_2(%arg0: i32) -> (i32, i32, i32) {
    %c0_i32 = arith.constant 0 : i32
    %c0_i32_0 = arith.constant 0 : i32
    %c0_i32_1 = arith.constant 0 : i32
    return %arg0, %c0_i32, %c0_i32_0 : i32, i32, i32
  }
  func.func @transform_3(%arg0: i32) -> (i32, i32) {
    %c0_i32 = arith.constant 0 : i32
    %c0_i32_0 = arith.constant 0 : i32
    %c0_i32_1 = arith.constant 0 : i32
    return %c0_i32, %c0_i32_0 : i32, i32
  }
  func.func @transform_4(%arg0: i32) -> (i32, i32) {
    %c0_i32 = arith.constant 0 : i32
    %c0_i32_0 = arith.constant 0 : i32
    %c0_i32_1 = arith.constant 0 : i32
    return %c0_i32, %c0_i32_0 : i32, i32
  }
  func.func @transform_5(%arg0: i32) -> (i32, i32) {
    %c0_i32 = arith.constant 0 : i32
    %c0_i32_0 = arith.constant 0 : i32
    %c0_i32_1 = arith.constant 0 : i32
    return %c0_i32, %c0_i32_0 : i32, i32
  }
  func.func @transform_6(%arg0: i32) -> (i32, i32, i32) {
    %c0_i32 = arith.constant 0 : i32
    %c0_i32_0 = arith.constant 0 : i32
    %c0_i32_1 = arith.constant 0 : i32
    return %arg0, %c0_i32, %c0_i32_0 : i32, i32, i32
  }
}

module attributes {stable_mosaic.version = 11 : i64} {
  func.func @encoder_kernel(%arg0: i32, %arg1: memref<3xf32, #tpu.memory_space<smem>>, %arg2: memref<1x4x8x128xf32, #tpu.memory_space<vmem>>, %arg3: memref<1x4x8xf32, #tpu.memory_space<vmem>>, %arg4: memref<1x16x4x128xf32, #tpu.memory_space<vmem>>, %arg5: memref<1x16x4xf32, #tpu.memory_space<vmem>>, %arg6: memref<128x128xbf16, #tpu.memory_space<vmem>>, %arg7: memref<1x128xf32, #tpu.memory_space<vmem>>, %arg8: memref<4x128x128xbf16, #tpu.memory_space<vmem>>, %arg9: memref<4x1x128xf32, #tpu.memory_space<vmem>>, %arg10: memref<1x4x128xf32, #tpu.memory_space<vmem>>, %arg11: memref<1x4x128xf32, #tpu.memory_space<vmem>>, %arg12: memref<1x16x128xf32, #tpu.memory_space<vmem>>) attributes {dimension_semantics = [#tpu.dimension_semantics<parallel>], iteration_bounds = array<i64: 2>, scalar_prefetch = 0 : i64, scratch_operands = 0 : i64, tpu.core_type = #tpu.core_type<tc>, window_params = [{transform_indices = @transform_0, window_bounds = array<i64: 3>}, {transform_indices = @transform_1, window_bounds = array<i64: 1, 4, 8, 128>}, {transform_indices = @transform_2, window_bounds = array<i64: 1, 4, 8>}, {transform_indices = @transform_3, window_bounds = array<i64: 1, 16, 4, 128>}, {transform_indices = @transform_4, window_bounds = array<i64: 1, 16, 4>}, {pipeline_mode = #tpu.pipeline_mode<synchronous>, transform_indices = @transform_5, window_bounds = array<i64: 128, 128>}, {pipeline_mode = #tpu.pipeline_mode<synchronous>, transform_indices = @transform_6, window_bounds = array<i64: 1, 128>}, {pipeline_mode = #tpu.pipeline_mode<synchronous>, transform_indices = @transform_7, window_bounds = array<i64: 4, 128, 128>}, {pipeline_mode = #tpu.pipeline_mode<synchronous>, transform_indices = @transform_8, window_bounds = array<i64: 4, 1, 128>}, {transform_indices = @transform_9, window_bounds = array<i64: 1, 4, 128>}, {transform_indices = @transform_10, window_bounds = array<i64: 1, 4, 128>}, {transform_indices = @transform_11, window_bounds = array<i64: 1, 16, 128>}]} {
    %c0 = arith.constant 0 : index
    %c0_0 = arith.constant 0 : index
    %c0_1 = arith.constant 0 : index
    %c0_2 = arith.constant 0 : index
    %0 = vector.load %arg2[%c0, %c0_0, %c0_1, %c0_2] : memref<1x4x8x128xf32, #tpu.memory_space<vmem>>, vector<1x4x8x128xf32>
    %1 = vector.shape_cast %0 : vector<1x4x8x128xf32> to vector<4x8x128xf32>
    %c0_3 = arith.constant 0 : index
    %c0_4 = arith.constant 0 : index
    %c0_5 = arith.constant 0 : index
    %2 = vector.load %arg3[%c0_3, %c0_4, %c0_5] : memref<1x4x8xf32, #tpu.memory_space<vmem>>, vector<1x4x8xf32>
    %3 = vector.shape_cast %2 : vector<1x4x8xf32> to vector<4x8xf32>
    %4 = vector.shape_cast %3 : vector<4x8xf32> to vector<4x8x1xf32>
    %5 = vector.broadcast %4 : vector<4x8x1xf32> to vector<4x8x128xf32>
    %6 = arith.mulf %1, %5 : vector<4x8x128xf32>
    %cst = arith.constant dense<0.000000e+00> : vector<4x128xf32>
    %7 = vector.multi_reduction <add>, %6, %cst [1] : vector<4x8x128xf32> to vector<4x128xf32>
    %cst_6 = arith.constant dense<0.000000e+00> : vector<4xf32>
    %8 = vector.multi_reduction <add>, %3, %cst_6 [1] : vector<4x8xf32> to vector<4xf32>
    %9 = vector.shape_cast %8 : vector<4xf32> to vector<4x1xf32>
    %cst_7 = arith.constant 9.99999993E-9 : f32
    %10 = vector.broadcast %cst_7 : f32 to vector<4x1xf32>
    %11 = arith.addf %9, %10 : vector<4x1xf32>
    %cst_8 = arith.constant 1.000000e+00 : f32
    %12 = vector.broadcast %cst_8 : f32 to vector<4x1xf32>
    %13 = arith.divf %12, %11 : vector<4x1xf32>
    %14 = vector.broadcast %13 : vector<4x1xf32> to vector<4x128xf32>
    %15 = arith.mulf %7, %14 : vector<4x128xf32>
    %16 = arith.truncf %15 : vector<4x128xf32> to vector<4x128xbf16>
    %c0_9 = arith.constant 0 : index
    %c0_10 = arith.constant 0 : index
    %17 = vector.load %arg6[%c0_9, %c0_10] : memref<128x128xbf16, #tpu.memory_space<vmem>>, vector<128x128xbf16>
    %cst_11 = arith.constant dense<0.000000e+00> : vector<4x128xf32>
    %18 = tpu.matmul %16, %17, %cst_11 {dimension_numbers = #tpu.dot_dimension_numbers<[1], [0], [0], [1], [0, 0, 1, 1], [], []>} : vector<4x128xbf16>, vector<128x128xbf16>, vector<4x128xf32> -> vector<4x128xf32>
    %c0_12 = arith.constant 0 : index
    %c0_13 = arith.constant 0 : index
    %19 = vector.load %arg7[%c0_12, %c0_13] : memref<1x128xf32, #tpu.memory_space<vmem>>, vector<1x128xf32>
    %20 = vector.broadcast %19 : vector<1x128xf32> to vector<4x128xf32>
    %21 = arith.addf %18, %20 : vector<4x128xf32>
    %22 = math.tanh %21 : vector<4x128xf32>
    %c0_14 = arith.constant 0 : index
    %c0_15 = arith.constant 0 : index
    %c0_16 = arith.constant 0 : index
    %23 = vector.load %arg10[%c0_14, %c0_15, %c0_16] : memref<1x4x128xf32, #tpu.memory_space<vmem>>, vector<1x4x128xf32>
    %24 = vector.shape_cast %23 : vector<1x4x128xf32> to vector<4x128xf32>
    %25 = vector.shape_cast %22 : vector<4x128xf32> to vector<1x4x128xf32>
    tpu.vector_store %arg10[%c0_14, %c0_15, %c0_16], %25 {strides = array<i32>} : memref<1x4x128xf32, #tpu.memory_space<vmem>>, vector<1x4x128xf32>,
    %26 = vector.extract_strided_slice %1 {offsets = [0, 0, 0], sizes = [4, 1, 128], strides = [1, 1, 1]} : vector<4x8x128xf32> to vector<4x1x128xf32>
    %27 = vector.shape_cast %26 : vector<4x1x128xf32> to vector<4x128xf32>
    %cst_17 = arith.constant 0.000000e+00 : f32
    %28 = vector.broadcast %cst_17 : f32 to vector<4x128xf32>
    %29 = arith.truncf %27 : vector<4x128xf32> to vector<4x128xbf16>
    %c0_18 = arith.constant 0 : index
    %c0_19 = arith.constant 0 : index
    %c0_20 = arith.constant 0 : index
    %30 = vector.load %arg8[%c0_18, %c0_19, %c0_20] : memref<4x128x128xbf16, #tpu.memory_space<vmem>>, vector<1x128x128xbf16>
    %31 = vector.shape_cast %30 : vector<1x128x128xbf16> to vector<128x128xbf16>
    %cst_21 = arith.constant dense<0.000000e+00> : vector<4x128xf32>
    %32 = tpu.matmul %29, %31, %cst_21 {dimension_numbers = #tpu.dot_dimension_numbers<[1], [0], [0], [1], [0, 0, 1, 1], [], []>} : vector<4x128xbf16>, vector<128x128xbf16>, vector<4x128xf32> -> vector<4x128xf32>
    %c0_22 = arith.constant 0 : index
    %c0_23 = arith.constant 0 : index
    %c0_24 = arith.constant 0 : index
    %33 = vector.load %arg9[%c0_22, %c0_23, %c0_24] : memref<4x1x128xf32, #tpu.memory_space<vmem>>, vector<1x1x128xf32>
    %34 = vector.shape_cast %33 : vector<1x1x128xf32> to vector<1x128xf32>
    %35 = vector.broadcast %34 : vector<1x128xf32> to vector<4x128xf32>
    %36 = arith.addf %32, %35 : vector<4x128xf32>
    %37 = math.tanh %36 : vector<4x128xf32>
    %38 = arith.truncf %37 : vector<4x128xf32> to vector<4x128xbf16>
    %c1 = arith.constant 1 : index
    %c0_25 = arith.constant 0 : index
    %c0_26 = arith.constant 0 : index
    %39 = vector.load %arg8[%c1, %c0_25, %c0_26] : memref<4x128x128xbf16, #tpu.memory_space<vmem>>, vector<1x128x128xbf16>
    %40 = vector.shape_cast %39 : vector<1x128x128xbf16> to vector<128x128xbf16>
    %cst_27 = arith.constant dense<0.000000e+00> : vector<4x128xf32>
    %41 = tpu.matmul %38, %40, %cst_27 {dimension_numbers = #tpu.dot_dimension_numbers<[1], [0], [0], [1], [0, 0, 1, 1], [], []>} : vector<4x128xbf16>, vector<128x128xbf16>, vector<4x128xf32> -> vector<4x128xf32>
    %c1_28 = arith.constant 1 : index
    %c0_29 = arith.constant 0 : index
    %c0_30 = arith.constant 0 : index
    %42 = vector.load %arg9[%c1_28, %c0_29, %c0_30] : memref<4x1x128xf32, #tpu.memory_space<vmem>>, vector<1x1x128xf32>
    %43 = vector.shape_cast %42 : vector<1x1x128xf32> to vector<1x128xf32>
    %44 = vector.broadcast %43 : vector<1x128xf32> to vector<4x128xf32>
    %45 = arith.addf %41, %44 : vector<4x128xf32>
    %46 = math.tanh %45 : vector<4x128xf32>
    %c0_31 = arith.constant 0 : index
    %47 = memref.load %arg1[%c0_31] : memref<3xf32, #tpu.memory_space<smem>>
    %48 = vector.broadcast %47 : f32 to vector<4x128xf32>
    %49 = arith.mulf %48, %46 : vector<4x128xf32>
    %50 = arith.addf %28, %49 : vector<4x128xf32>
    %51 = arith.truncf %46 : vector<4x128xf32> to vector<4x128xbf16>
    %c2 = arith.constant 2 : index
    %c0_32 = arith.constant 0 : index
    %c0_33 = arith.constant 0 : index
    %52 = vector.load %arg8[%c2, %c0_32, %c0_33] : memref<4x128x128xbf16, #tpu.memory_space<vmem>>, vector<1x128x128xbf16>
    %53 = vector.shape_cast %52 : vector<1x128x128xbf16> to vector<128x128xbf16>
    %cst_34 = arith.constant dense<0.000000e+00> : vector<4x128xf32>
    %54 = tpu.matmul %51, %53, %cst_34 {dimension_numbers = #tpu.dot_dimension_numbers<[1], [0], [0], [1], [0, 0, 1, 1], [], []>} : vector<4x128xbf16>, vector<128x128xbf16>, vector<4x128xf32> -> vector<4x128xf32>
    %c2_35 = arith.constant 2 : index
    %c0_36 = arith.constant 0 : index
    %c0_37 = arith.constant 0 : index
    %55 = vector.load %arg9[%c2_35, %c0_36, %c0_37] : memref<4x1x128xf32, #tpu.memory_space<vmem>>, vector<1x1x128xf32>
    %56 = vector.shape_cast %55 : vector<1x1x128xf32> to vector<1x128xf32>
    %57 = vector.broadcast %56 : vector<1x128xf32> to vector<4x128xf32>
    %58 = arith.addf %54, %57 : vector<4x128xf32>
    %59 = math.tanh %58 : vector<4x128xf32>
    %c1_38 = arith.constant 1 : index
    %60 = memref.load %arg1[%c1_38] : memref<3xf32, #tpu.memory_space<smem>>
    %61 = vector.broadcast %60 : f32 to vector<4x128xf32>
    %62 = arith.mulf %61, %59 : vector<4x128xf32>
    %63 = arith.addf %50, %62 : vector<4x128xf32>
    %64 = arith.truncf %59 : vector<4x128xf32> to vector<4x128xbf16>
    %c3 = arith.constant 3 : index
    %c0_39 = arith.constant 0 : index
    %c0_40 = arith.constant 0 : index
    %65 = vector.load %arg8[%c3, %c0_39, %c0_40] : memref<4x128x128xbf16, #tpu.memory_space<vmem>>, vector<1x128x128xbf16>
    %66 = vector.shape_cast %65 : vector<1x128x128xbf16> to vector<128x128xbf16>
    %cst_41 = arith.constant dense<0.000000e+00> : vector<4x128xf32>
    %67 = tpu.matmul %64, %66, %cst_41 {dimension_numbers = #tpu.dot_dimension_numbers<[1], [0], [0], [1], [0, 0, 1, 1], [], []>} : vector<4x128xbf16>, vector<128x128xbf16>, vector<4x128xf32> -> vector<4x128xf32>
    %c3_42 = arith.constant 3 : index
    %c0_43 = arith.constant 0 : index
    %c0_44 = arith.constant 0 : index
    %68 = vector.load %arg9[%c3_42, %c0_43, %c0_44] : memref<4x1x128xf32, #tpu.memory_space<vmem>>, vector<1x1x128xf32>
    %69 = vector.shape_cast %68 : vector<1x1x128xf32> to vector<1x128xf32>
    %70 = vector.broadcast %69 : vector<1x128xf32> to vector<4x128xf32>
    %71 = arith.addf %67, %70 : vector<4x128xf32>
    %72 = math.tanh %71 : vector<4x128xf32>
    %c2_45 = arith.constant 2 : index
    %73 = memref.load %arg1[%c2_45] : memref<3xf32, #tpu.memory_space<smem>>
    %74 = vector.broadcast %73 : f32 to vector<4x128xf32>
    %75 = arith.mulf %74, %72 : vector<4x128xf32>
    %76 = arith.addf %63, %75 : vector<4x128xf32>
    %c0_46 = arith.constant 0 : index
    %c0_47 = arith.constant 0 : index
    %c0_48 = arith.constant 0 : index
    %77 = vector.load %arg11[%c0_46, %c0_47, %c0_48] : memref<1x4x128xf32, #tpu.memory_space<vmem>>, vector<1x4x128xf32>
    %78 = vector.shape_cast %77 : vector<1x4x128xf32> to vector<4x128xf32>
    %79 = vector.shape_cast %76 : vector<4x128xf32> to vector<1x4x128xf32>
    tpu.vector_store %arg11[%c0_46, %c0_47, %c0_48], %79 {strides = array<i32>} : memref<1x4x128xf32, #tpu.memory_space<vmem>>, vector<1x4x128xf32>,
    %c0_49 = arith.constant 0 : index
    %c0_50 = arith.constant 0 : index
    %c0_51 = arith.constant 0 : index
    %c0_52 = arith.constant 0 : index
    %80 = vector.load %arg4[%c0_49, %c0_50, %c0_51, %c0_52] : memref<1x16x4x128xf32, #tpu.memory_space<vmem>>, vector<1x16x4x128xf32>
    %81 = vector.shape_cast %80 : vector<1x16x4x128xf32> to vector<16x4x128xf32>
    %c0_53 = arith.constant 0 : index
    %c0_54 = arith.constant 0 : index
    %c0_55 = arith.constant 0 : index
    %82 = vector.load %arg5[%c0_53, %c0_54, %c0_55] : memref<1x16x4xf32, #tpu.memory_space<vmem>>, vector<1x16x4xf32>
    %83 = vector.shape_cast %82 : vector<1x16x4xf32> to vector<16x4xf32>
    %84 = vector.shape_cast %83 : vector<16x4xf32> to vector<16x4x1xf32>
    %85 = vector.broadcast %84 : vector<16x4x1xf32> to vector<16x4x128xf32>
    %86 = arith.mulf %81, %85 : vector<16x4x128xf32>
    %cst_56 = arith.constant dense<0.000000e+00> : vector<16x128xf32>
    %87 = vector.multi_reduction <add>, %86, %cst_56 [1] : vector<16x4x128xf32> to vector<16x128xf32>
    %cst_57 = arith.constant dense<0.000000e+00> : vector<16xf32>
    %88 = vector.multi_reduction <add>, %83, %cst_57 [1] : vector<16x4xf32> to vector<16xf32>
    %89 = vector.shape_cast %88 : vector<16xf32> to vector<16x1xf32>
    %cst_58 = arith.constant 9.99999993E-9 : f32
    %90 = vector.broadcast %cst_58 : f32 to vector<16x1xf32>
    %91 = arith.addf %89, %90 : vector<16x1xf32>
    %cst_59 = arith.constant 1.000000e+00 : f32
    %92 = vector.broadcast %cst_59 : f32 to vector<16x1xf32>
    %93 = arith.divf %92, %91 : vector<16x1xf32>
    %94 = vector.broadcast %93 : vector<16x1xf32> to vector<16x128xf32>
    %95 = arith.mulf %87, %94 : vector<16x128xf32>
    %c0_60 = arith.constant 0 : index
    %c0_61 = arith.constant 0 : index
    %c0_62 = arith.constant 0 : index
    %96 = vector.load %arg12[%c0_60, %c0_61, %c0_62] : memref<1x16x128xf32, #tpu.memory_space<vmem>>, vector<1x16x128xf32>
    %97 = vector.shape_cast %96 : vector<1x16x128xf32> to vector<16x128xf32>
    %98 = vector.shape_cast %95 : vector<16x128xf32> to vector<1x16x128xf32>
    tpu.vector_store %arg12[%c0_60, %c0_61, %c0_62], %98 {strides = array<i32>} : memref<1x16x128xf32, #tpu.memory_space<vmem>>, vector<1x16x128xf32>,
    return
  }
  func.func @transform_0(%arg0: i32) -> i32 {
    %c0_i32 = arith.constant 0 : i32
    %c0_i32_0 = arith.constant 0 : i32
    return %c0_i32 : i32
  }
  func.func @transform_1(%arg0: i32) -> (i32, i32, i32, i32) {
    %c0_i32 = arith.constant 0 : i32
    %c0_i32_0 = arith.constant 0 : i32
    %c0_i32_1 = arith.constant 0 : i32
    %c0_i32_2 = arith.constant 0 : i32
    return %arg0, %c0_i32, %c0_i32_0, %c0_i32_1 : i32, i32, i32, i32
  }
  func.func @transform_2(%arg0: i32) -> (i32, i32, i32) {
    %c0_i32 = arith.constant 0 : i32
    %c0_i32_0 = arith.constant 0 : i32
    %c0_i32_1 = arith.constant 0 : i32
    return %arg0, %c0_i32, %c0_i32_0 : i32, i32, i32
  }
  func.func @transform_3(%arg0: i32) -> (i32, i32, i32, i32) {
    %c0_i32 = arith.constant 0 : i32
    %c0_i32_0 = arith.constant 0 : i32
    %c0_i32_1 = arith.constant 0 : i32
    %c0_i32_2 = arith.constant 0 : i32
    return %arg0, %c0_i32, %c0_i32_0, %c0_i32_1 : i32, i32, i32, i32
  }
  func.func @transform_4(%arg0: i32) -> (i32, i32, i32) {
    %c0_i32 = arith.constant 0 : i32
    %c0_i32_0 = arith.constant 0 : i32
    %c0_i32_1 = arith.constant 0 : i32
    return %arg0, %c0_i32, %c0_i32_0 : i32, i32, i32
  }
  func.func @transform_5(%arg0: i32) -> (i32, i32) {
    %c0_i32 = arith.constant 0 : i32
    %c0_i32_0 = arith.constant 0 : i32
    %c0_i32_1 = arith.constant 0 : i32
    return %c0_i32, %c0_i32_0 : i32, i32
  }
  func.func @transform_6(%arg0: i32) -> (i32, i32) {
    %c0_i32 = arith.constant 0 : i32
    %c0_i32_0 = arith.constant 0 : i32
    %c0_i32_1 = arith.constant 0 : i32
    return %c0_i32, %c0_i32_0 : i32, i32
  }
  func.func @transform_7(%arg0: i32) -> (i32, i32, i32) {
    %c0_i32 = arith.constant 0 : i32
    %c0_i32_0 = arith.constant 0 : i32
    %c0_i32_1 = arith.constant 0 : i32
    %c0_i32_2 = arith.constant 0 : i32
    return %c0_i32, %c0_i32_0, %c0_i32_1 : i32, i32, i32
  }
  func.func @transform_8(%arg0: i32) -> (i32, i32, i32) {
    %c0_i32 = arith.constant 0 : i32
    %c0_i32_0 = arith.constant 0 : i32
    %c0_i32_1 = arith.constant 0 : i32
    %c0_i32_2 = arith.constant 0 : i32
    return %c0_i32, %c0_i32_0, %c0_i32_1 : i32, i32, i32
  }
  func.func @transform_9(%arg0: i32) -> (i32, i32, i32) {
    %c0_i32 = arith.constant 0 : i32
    %c0_i32_0 = arith.constant 0 : i32
    %c0_i32_1 = arith.constant 0 : i32
    return %arg0, %c0_i32, %c0_i32_0 : i32, i32, i32
  }
  func.func @transform_10(%arg0: i32) -> (i32, i32, i32) {
    %c0_i32 = arith.constant 0 : i32
    %c0_i32_0 = arith.constant 0 : i32
    %c0_i32_1 = arith.constant 0 : i32
    return %arg0, %c0_i32, %c0_i32_0 : i32, i32, i32
  }
  func.func @transform_11(%arg0: i32) -> (i32, i32, i32) {
    %c0_i32 = arith.constant 0 : i32
    %c0_i32_0 = arith.constant 0 : i32
    %c0_i32_1 = arith.constant 0 : i32
    return %arg0, %c0_i32, %c0_i32_0 : i32, i32, i32
  }
}

</mosaic_0001>

<bundles_post_ra>
// kernel: squeeze.2
= control target key start
LH: loop header
LB: loop body
LE: loop exit
PB: predicated region body
PF: predicated region fallthrough
CT: control target
= control target key end

     0   :  { %s35_s8 = smov 122   ;;  %vm8_vm0 = vcmask 15360   ;;  %s36_s11 = smov 124   ;;  %s62_s0 = inlined_call_operand.vmem [shape: f32[2,8], index: 0, kind: input, shape index: {}]   ;;  %s63_s1 = inlined_call_operand.vmem [shape: f32[8,2], index: 1, kind: output, shape index: {}]  }
   0x1   :  { %v5_v0 = vld [vmem:[%s62_s0] sm:$0x3]  ;;  %s34_s0 = smov 126  }
   0x2   :  { %6 = vst [vmem:[#allocation0] sm:$0x3] %v5_v0 }
   0x9   :  { %v10_v1 = vld [vmem:[#allocation0] sm:$0x3]  }
   0xa   :  { %v22_v2 = vld [vmem:[#allocation0] sm:$0x3]   ;;  %11 = vrot.lane.b32.xlu0 %v10_v1, %s34_s0 }
   0xb   :  { %23 = vrot.lane.b32.xlu1 %v22_v2, %s35_s8  ;;  %v7_v3 = vld [vmem:[#allocation0] sm:$0x3]  }
   0xc   :  { %v16_v4 = vld [vmem:[#allocation0] sm:$0x3]   ;;  %9 = vst.msk [vmem:[%s63_s1] ss:$4 sm:$0x3] %vm8_vm0, %v7_v3  }
   0xe   :  { %17 = vrot.lane.b32.xlu0 %v16_v4, %s36_s11 }
  0x7c   :  { %v12_v5 = vpop.permute.xlu0 %11  }
  0x7d   :  { %v24_v6 = vpop.permute.xlu1 %23   ;;  %28 = vst.msk [vmem:[%s63_s1 + $0x1] ss:$4 sm:$0x3] %vm8_vm0, %v12_v5  }
  0x7e   :  { %30 = vst.msk [vmem:[%s63_s1 + $0x3] ss:$4 sm:$0x3] %vm8_vm0, %v24_v6  }
  0x80   :  { %v18_v7 = vpop.permute.xlu0 %17  }
  0x81   :  { %29 = vst.msk [vmem:[%s63_s1 + $0x2] ss:$4 sm:$0x3] %vm8_vm0, %v18_v7  }

// kernel: trignet_forward.3
= control target key start
LH: loop header
LB: loop body
LE: loop exit
PB: predicated region body
PF: predicated region fallthrough
CT: control target
= control target key end

     0   :  { %s1223_s21 = smov 0   ;;  %s1381_s0 = inlined_call_operand.vmem [shape: f32[2,24,128], index: 0, kind: input, shape index: {}]   ;;  %s1382_s1 = inlined_call_operand.vmem [shape: f32[2,24,24], index: 1, kind: input, shape index: {}]   ;;  %s1383_s2 = inlined_call_operand.vmem [shape: f32[2,1,24], index: 2, kind: input, shape index: {}]   ;;  %s1384_s3 = inlined_call_operand.vmem [shape: bf16[128,384], index: 3, kind: input, shape index: {}]   ;;  %s1385_s4 = inlined_call_operand.vmem [shape: bf16[128,128], index: 4, kind: input, shape index: {}]   ;;  %s1386_s5 = inlined_call_operand.vmem [shape: f32[1,128], index: 5, kind: input, shape index: {}]   ;;  %s1387_s6 = inlined_call_operand.vmem [shape: f32[2,1,128], index: 6, kind: output, shape index: {}]  }
   0x1 LB: > { %s970_s22 = sadd.s32 4294967295, %s1183_s21   ;;  %p974_p0 = scmp.ge.s32.totalorder %s1183_s21, 1  ;;  %s1183_s21 = sphi %s1223_s21, %s16_s21  }
   0x2   : > { %p230_p1 = scmp.lt.s32.totalorder %s1183_s21, 3 }
   0x4   : > { %p231_p2 = pnand %p974_p0, %p230_p1 }
   0x5   : > { %p266_p3 = scmp.lt.s32.totalorder (!%p231_p2), %s970_s22, 1 }
   0x6   : > { %234 = sbr.rel (%p231_p2) target bundleno = 1385 (0x569), region = 44 }
   0xb   : > { %v1123_v0 = vld [vmem:[%s1384_s3 + $0xac] ss:$12 sps:$4 sm:$0xff]   ;;  %v1125_v1 = vld [vmem:[%s1384_s3 + $0xa8] ss:$12 sps:$4 sm:$0xff]   ;;  %v1185_v2 = vmov 0   ;;  %s1389_s22 = smov (!%p266_p3, %s970_s22), 1 }
   0xc   : > { %480 = vmatprep.mubr.bf16.mxu0 %v1185_v2  ;;  %448 = vmatprep.subr.bf16.mxu0 %v1123_v0  ;;  %v1126_v3 = vld [vmem:[%s1384_s3 + $0x94] ss:$12 sps:$4 sm:$0xff]   ;;  %v1128_v4 = vld [vmem:[%s1384_s3 + $0x90] ss:$12 sps:$4 sm:$0xff]   ;;  %s1111_s9 = smul.u32 24, %s1389_s22  ;;  %vm658_vm0 = vcmask 1043456   ;;  %s278_s13 = scalar_lea.vmem %s1383_s2, %s1389_s22 }
   0xd   : > { %449 = vmatpush1.bf16.msra.mxu0 %v1125_v1  ;;  %v1129_v5 = vld [vmem:[%s1384_s3 + $0x7c] ss:$12 sps:$4 sm:$0xff]   ;;  %v1131_v6 = vld [vmem:[%s1384_s3 + $0x78] ss:$12 sps:$4 sm:$0xff]   ;;  %v1134_v8 = vld [vmem:[%s1384_s3 + $0x60] ss:$12 sps:$4 sm:$0xff]   ;;  %s281_s12 = scalar_lea.vmem %s1387_s6, %s1389_s22 }
   0xe   : > { %450 = vmatprep.subr.bf16.mxu0 %v1126_v3  ;;  %s1257_s14 = scalar_lea.vmem %s1381_s0, %s1111_s9  ;;  %v1132_v7 = vld [vmem:[%s1384_s3 + $0x64] ss:$12 sps:$4 sm:$0xff]   ;;  %v1135_v10 = vld [vmem:[%s1384_s3 + $0x4c] ss:$12 sps:$4 sm:$0xff]   ;;  %v1137_v15 = vld [vmem:[%s1384_s3 + $0x48] ss:$12 sps:$4 sm:$0xff]   ;;  %s275_s11 = scalar_lea.vmem %s1382_s1, %s1111_s9 }
   0xf   : > { %v1266_v9 = vld [vmem:[%s1257_s14] sm:$0xff]  ;;  %v1272_v11 = vld [vmem:[%s1257_s14 + $0x8] sm:$0xff]  ;;  %v1147_v13 = vld [vmem:[%s1384_s3 + $0xb0] ss:$12 sps:$4 sm:$0xff]   ;;  %vm613_vm2 = vcmask 195584   ;;  %vm1187_vm5 = vmmov 0  }
  0x10   : > { %v286_v12 = vpack.c.bf16 %v1272_v11, %v1266_v9  ;;  %v1148_v14 = vld [vmem:[%s1384_s3 + $0x98] ss:$12 sps:$4 sm:$0xff]   ;;  %1045 = vmatprep.subr.bf16.mxu1 %v1147_v13  ;;  %v1138_v16 = vld [vmem:[%s1384_s3 + $0x34] ss:$12 sps:$4 sm:$0xff]   ;;  %v1140_v18 = vld [vmem:[%s1384_s3 + $0x30] ss:$12 sps:$4 sm:$0xff]  }
  0x11   : > { %451 = vmatpush1.bf16.msra.mxu0 %v1128_v4  ;;  %1046 = vmatpush3.bf16.msra.mxu1 %v1147_v13  ;;  %v1149_v17 = vld [vmem:[%s1384_s3 + $0x80] ss:$12 sps:$4 sm:$0xff]   ;;  %v1141_v19 = vld [vmem:[%s1384_s3 + $0x1c] ss:$12 sps:$4 sm:$0xff]   ;;  %v1143_v21 = vld [vmem:[%s1384_s3 + $0x18] ss:$12 sps:$4 sm:$0xff]  }
  0x12   : > { %452 = vmatprep.subr.bf16.mxu0 %v1129_v5  ;;  %1061 = vmatprep.mubr.bf16.mxu1 %v286_v12  ;;  %v1150_v20 = vld [vmem:[%s1384_s3 + $0x68] ss:$12 sps:$4 sm:$0xff]   ;;  %v1144_v22 = vld [vmem:[%s1384_s3 + $0x4] ss:$12 sps:$4 sm:$0xff]   ;;  %v1146_v24 = vld [vmem:[%s1384_s3] ss:$12 sps:$4 sm:$0xff]  }
  0x13   : > { %1047 = vmatprep.subr.bf16.mxu1 %v1148_v14  ;;  %v1151_v23 = vld [vmem:[%s1384_s3 + $0x50] ss:$12 sps:$4 sm:$0xff]   ;;  %v1152_v25 = vld [vmem:[%s1384_s3 + $0x38] ss:$12 sps:$4 sm:$0xff]   ;;  %v1153_v26 = vld [vmem:[%s1384_s3 + $0x20] ss:$12 sps:$4 sm:$0xff]  }
  0x14   : > { %v1319_v27 = vld [vmem:[%s1257_s14 + $0x10] sm:$0xff]  ;;  %v604_v50 = vld [vmem:[%s275_s11] sm:$0xff]  ;;  %v605_v56 = vld [vmem:[%s275_s11 + $0x8] sm:$0xff]  ;;  %vm787_vm6 = vcmask 188416  }
  0x15   : > { %453 = vmatpush1.bf16.msra.mxu0 %v1131_v6  ;;  %1048 = vmatpush3.bf16.msra.mxu1 %v1148_v14  ;;  %v287_v28 = vpack.c.bf16 %v1319_v27, %v1319_v27  ;;  %v1154_v29 = vld [vmem:[%s1384_s3 + $0x8] ss:$12 sps:$4 sm:$0xff]   ;;  %vm607_vm3 = vcmp.gt.f32.partialorder %v604_v50, 0.0  ;;  %vm608_vm4 = vcmp.gt.f32.partialorder %v605_v56, 0.0  ;;  %v1162_v50 = vld [vmem:[%s1385_s4] sm:$0xff]  }
  0x16   : > { %454 = vmatprep.subr.bf16.mxu0 %v1132_v7  ;;  %1049 = vmatprep.subr.bf16.mxu1 %v1149_v17  ;;  %v606_v49 = vld [vmem:[%s275_s11 + $0x10] sm:$0xff] }
  0x17   : > { %vm609_vm1 = vcmp.gt.f32.partialorder %v606_v49, 0.0 }
  0x19   : > { %455 = vmatpush1.bf16.msra.mxu0 %v1134_v8  ;;  %1050 = vmatpush3.bf16.msra.mxu1 %v1149_v17 }
  0x1a   : > { %456 = vmatprep.subr.bf16.mxu0 %v1135_v10  ;;  %1051 = vmatprep.subr.bf16.mxu1 %v1150_v20 }
  0x1d   : > { %457 = vmatpush1.bf16.msra.mxu0 %v1137_v15  ;;  %1052 = vmatpush3.bf16.msra.mxu1 %v1150_v20 }
  0x1e   : > { %458 = vmatprep.subr.bf16.mxu0 %v1138_v16  ;;  %1053 = vmatprep.subr.bf16.mxu1 %v1151_v23 }
  0x21   : > { %459 = vmatpush1.bf16.msra.mxu0 %v1140_v18  ;;  %1054 = vmatpush3.bf16.msra.mxu1 %v1151_v23 }
  0x22   : > { %460 = vmatprep.subr.bf16.mxu0 %v1141_v19  ;;  %1055 = vmatprep.subr.bf16.mxu1 %v1152_v25 }
  0x25   : > { %461 = vmatpush1.bf16.msra.mxu0 %v1143_v21  ;;  %1056 = vmatpush3.bf16.msra.mxu1 %v1152_v25 }
  0x26   : > { %462 = vmatprep.subr.bf16.mxu0 %v1144_v22  ;;  %1057 = vmatprep.subr.bf16.mxu1 %v1153_v26 }
  0x29   : > { %463 = vmatpush1.bf16.msra.mxu0 %v1146_v24  ;;  %1058 = vmatpush3.bf16.msra.mxu1 %v1153_v26 }
  0x2a   : > { %1059 = vmatprep.subr.bf16.mxu1 %v1154_v29 }
  0x2c   : > { %481 = vmatmul.mubr.bf16.vlgmr.msra.gmra.mxu0 %v286_v12 }
  0x2d   : > { %490 = vmatprep.mubr.bf16.mxu0 %v1185_v2  ;;  %1060 = vmatpush3.bf16.msra.mxu1 %v1154_v29 }
  0x30   : > { %1062 = vmatmul.mubr.bf16.vlgmr.msra.gmra.mxu1 %v287_v28 }
  0x34   : > { %491 = vmatmul.mubr.bf16.gmra.mxu0 %v287_v28 }
  0xec   : > { %v482_v30 = vpop.f32.mrf.mxu0 }
  0xee   : > { %v484_v31 = vpop.f32.mrf.mxu0 }
  0xf0   : > { %v486_v32 = vpop.f32.mrf.mxu0  ;;  %v1063_v42 = vpop.f32.mrf.mxu1 }
  0xf1   : > { %v547_v33 = vpack.c.bf16 %v486_v32, %v482_v30  ;;  %v552_v43 = vpack.c.bf16 %v1063_v42, %v1063_v42  ;;  %v1161_v42 = vld [vmem:[%s1385_s4 + $0x8] sm:$0xff]  }
  0xf2   : > { %v488_v34 = vpop.f32.mrf.mxu0  ;;  %v533_v44 = vpop.f32.mrf.mxu1 }
  0xf3   : > { %1069 = vmatprep.mubr.bf16.mxu1 %v547_v33  ;;  %v549_v39 = vpack.c.bf16 %v488_v34, %v484_v31  ;;  %v660_v45 = vsel %vm658_vm0, %v552_v43, 0  ;;  %v1186_v33 = vmov 0.0   ;;  %v713_v34 = vld [vmem:[%s278_s13] sm:$0x1] }
  0xf4   : > { %v492_v35 = vpop.f32.mrf.mxu0  ;;  %v1064_v46 = vpop.f32.mrf.mxu1  ;;  %1090 = vmatprep.subr.bf16.mxu0 %v1186_v33  ;;  %1106 = vmatprep.mubr.msk.bf16.mxu0 %vm1187_vm5, %v1186_v33 }
  0xf5   : > { %v548_v41 = vpack.c.bf16 %v492_v35, %v492_v35  ;;  %v1155_v35 = vld [vmem:[%s1385_s4 + $0x38] sm:$0xff]  }
  0xf6   : > { %v494_v36 = vpop.f32.mrf.mxu0  ;;  %v536_v47 = vpop.f32.mrf.mxu1  ;;  %1091 = vmatpush3.bf16.msra.mxu0 %v1155_v35 }
  0xf7   : > { %v550_v37 = vpack.c.bf16 %v494_v36, %v494_v36  ;;  %v551_v48 = vpack.c.bf16 %v536_v47, %v533_v44  ;;  %v788_v36 = vsel %vm787_vm6, %v713_v34, 0.0  ;;  %1092 = vmatprep.subr.bf16.mxu0 %v1186_v33 }
  0xf8   : > { %v496_v38 = vpop.f32.mrf.mxu0 }
  0xf9   : > { %1065 = vmatprep.subr.bf16.mxu1 %v550_v37  ;;  %v1157_v38 = vld [vmem:[%s1385_s4 + $0x28] sm:$0xff]  }
  0xfa   : > { %v497_v40 = vpop.f32.mrf.mxu0  ;;  %1066 = vmatpush3.bf16.xpose.msra.mxu1 %v550_v37  ;;  %v1156_v37 = vld [vmem:[%s1385_s4 + $0x30] sm:$0xff]  }
  0xfb   : > { %1067 = vmatprep.subr.bf16.mxu1 %v549_v39  ;;  %1093 = vmatpush3.bf16.msra.mxu0 %v1156_v37  ;;  %v1159_v40 = vld [vmem:[%s1385_s4 + $0x18] sm:$0xff]  }
  0xfc   : > { %1094 = vmatprep.subr.bf16.mxu0 %v1186_v33 }
  0xff   : > { %1095 = vmatpush3.bf16.msra.mxu0 %v1157_v38 }
 0x100   : > { %1096 = vmatprep.subr.bf16.mxu0 %v1186_v33 }
 0x102   : > { %1068 = vmatpush3.bf16.xpose.msra.mxu1 %v549_v39  ;;  %v1158_v39 = vld [vmem:[%s1385_s4 + $0x20] sm:$0xff]  }
 0x103   : > { %1110 = vmatprep.subr.msk.bf16.mxu1 %vm658_vm0, %v552_v43  ;;  %1097 = vmatpush3.bf16.msra.mxu0 %v1158_v39 }
 0x104   : > { %1098 = vmatprep.subr.bf16.mxu0 %v1186_v33 }
 0x107   : > { %1099 = vmatpush3.bf16.msra.mxu0 %v1159_v40 }
 0x108   : > { %1100 = vmatprep.subr.bf16.mxu0 %v1186_v33 }
 0x109   : > { %1070 = vmatmul.mubr.bf16.vlgmr.msra.gmra.mxu1 %v548_v41  ;;  %v1160_v41 = vld [vmem:[%s1385_s4 + $0x10] sm:$0xff]  }
 0x10a   : > { %1074 = vmatpush3.bf16.msra.mxu1 %v660_v45 }
 0x10b   : > { %1075 = vmatprep.subr.bf16.mxu1 %v551_v48  ;;  %1101 = vmatpush3.bf16.msra.mxu0 %v1160_v41 }
 0x10c   : > { %1102 = vmatprep.subr.bf16.mxu0 %v1186_v33 }
 0x10e   : > { %1076 = vmatpush3.bf16.msra.mxu1 %v551_v48 }
 0x10f   : > { %1081 = vmatprep.subr.mxu1 %v1186_v33  ;;  %1103 = vmatpush3.bf16.msra.mxu0 %v1161_v42 }
 0x110   : > { %1104 = vmatprep.subr.bf16.mxu0 %v1186_v33 }
 0x113   : > { %1105 = vmatpush3.bf16.msra.mxu0 %v1162_v50 }
 0x1c9   : > { %v1071_v51 = vpop.f32.mrf.mxu1 }
 0x1ca   : > { %v603_v52 = vmul.f32 0.088388346, %v1071_v51 }
 0x1cb   : > { %v587_v53 = vpop.f32.mrf.mxu1 }
 0x1cc   : > { %v601_v54 = vmul.f32 0.088388346, %v587_v53  ;;  %v612_v55 = vsel %vm609_vm1, %v603_v52, -1e+30 }
 0x1cd   : > { %v1072_v57 = vpop.f32.mrf.mxu1  ;;  %v620_v58 = vsel %vm613_vm2, %v612_v55, -inf }
 0x1ce   : > { %621 = vmax.xlane.f32.xlu1 %v620_v58  ;;  %v610_v59 = vsel %vm607_vm3, %v601_v54, -1e+30 }
 0x1cf   : > { %v590_v60 = vpop.f32.mrf.mxu1  ;;  %v614_v61 = vsel %vm613_vm2, %v610_v59, -inf }
 0x1d0   : > { %v602_v62 = vmul.f32 0.088388346, %v590_v60  ;;  %615 = vmax.xlane.f32.xlu0 %v614_v61 }
 0x1d2   : > { %v611_v63 = vsel %vm608_vm4, %v602_v62, -1e+30 }
 0x1d3   : > { %v617_v0 = vsel %vm613_vm2, %v611_v63, -inf }
 0x1d4   : > { %618 = vmax.xlane.f32.xlu0 %v617_v0 }
 0x257   : > { %v622_v1 = vpop.xlane.xlu1 %621 }
 0x258   : > { %v625_v2 = vsub.f32 %v612_v55, %v622_v1 }
 0x259   : > { %v616_v3 = vpop.xlane.xlu0 %615 }
 0x25a   : > { %v623_v4 = vsub.f32 %v610_v59, %v616_v3  ;;  %v630_v5 = vmul.f32 1.442695, %v625_v2 }
 0x25c   : > { %v626_v6 = vmul.f32 1.442695, %v623_v4 }
 0x25d   : > { %v619_v7 = vpop.xlane.xlu0 %618 }
 0x25e   : > { %1163 = vpow2.f32 %v626_v6  ;;  %v624_v8 = vsub.f32 %v611_v63, %v619_v7 }
 0x25f   : > { %1165 = vpow2.f32 %v630_v5 }
 0x260   : > { %v628_v10 = vmul.f32 1.442695, %v624_v8 }
 0x262   : > { %1167 = vpow2.f32 %v628_v10 }
 0x26b   : > { %v1164_v12 = vpop.eup %1163 }
 0x26c   : > { %v632_v13 = vsel %vm613_vm2, %v1164_v12, 0.0  ;;  %v1166_v14 = vpop.eup %1165 }
 0x26d   : > { %633 = vadd.xlane.f32.xlu1 %v632_v13  ;;  %v638_v16 = vsel %vm613_vm2, %v1166_v14, 0.0 }
 0x26f   : > { %v1168_v15 = vpop.eup %1167 }
 0x270   : > { %v635_v17 = vsel %vm613_vm2, %v1168_v15, 0.0 }
 0x271   : > { %639 = vadd.xlane.f32.xlu1 %v638_v16  ;;  %636 = vadd.xlane.f32.xlu0 %v635_v17 }
 0x275   : > { %789 = vadd.xlane.f32.xlu0 %v788_v36 }
 0x2f6   : > { %v634_v18 = vpop.xlane.xlu1 %633 }
 0x2f7   : > { %v641_v19 = vadd.f32 1e-08, %v634_v18 }
 0x2f9   : > { %1169 = vrcp.f32 %v641_v19 }
 0x2fa   : > { %v640_v20 = vpop.xlane.xlu1 %639  ;;  %v637_v21 = vpop.xlane.xlu0 %636 }
 0x2fb   : > { %v643_v22 = vadd.f32 1e-08, %v640_v20  ;;  %v642_v23 = vadd.f32 1e-08, %v637_v21 }
 0x2fd   : > { %1171 = vrcp.f32 %v643_v22 }
 0x2fe   : > { %1173 = vrcp.f32 %v642_v23 }
 0x306   : > { %v1170_v24 = vpop.eup %1169 }
 0x307   : > { %v647_v29 = vmul.f32 %v1170_v24, %v1164_v12 }
 0x30a   : > { %v1172_v25 = vpop.eup %1171 }
 0x30b   : > { %v1174_v26 = vpop.eup %1173  ;;  %v649_v28 = vmul.f32 %v1172_v25, %v1166_v14 }
 0x30c   : > { %v648_v30 = vmul.f32 %v1174_v26, %v1168_v15 }
 0x30d   : > { %v651_v31 = vpack.c.bf16 %v649_v28, %v649_v28 }
 0x30e   : > { %v650_v32 = vpack.c.bf16 %v648_v30, %v647_v29 }
 0x310   : > { %1077 = vmatprep.mubr.msk.bf16.mxu1 %vm613_vm2, %v650_v32 }
 0x311   : > { %1078 = vmatmul.mubr.msk.bf16.vlgmr.msra.gmra.mxu1 %vm613_vm2, %v651_v31 }
 0x312   : > { %1087 = vmatprep.mubr.msk.f32.mxu1 %vm1187_vm5, %v1186_v33 }
 0x3d1   : > { %v1079_v43 = vpop.f32.mrf.mxu1 }
 0x3d2   : > { %v712_v44 = vadd.f32 %v1079_v43, %v1319_v27  ;;  %v790_v27 = vpop.xlane.xlu0 %789 }
 0x3d3   : > { %v696_v45 = vpop.f32.mrf.mxu1  ;;  %v791_v51 = vadd.f32 1e-08, %v790_v27 }
 0x3d4   : > { %1082 = vmatpush3.msra.mxu1 %v712_v44  ;;  %v710_v49 = vadd.f32 %v696_v45, %v1266_v9  ;;  %v812_v9 = vld [vmem:[%s1386_s5] sm:$0x1] }
 0x3d5   : > { %v1080_v46 = vpop.f32.mrf.mxu1  ;;  %1083 = vmatprep.subr.mxu1 %v1186_v33  ;;  %1175 = vrcp.f32 %v791_v51 }
 0x3d7   : > { %v699_v47 = vpop.f32.mrf.mxu1 }
 0x3d8   : > { %v711_v48 = vadd.f32 %v699_v47, %v1272_v11 }
 0x3da   : > { %1084 = vmatpush3.msra.mxu1 %v711_v48 }
 0x3db   : > { %1085 = vmatprep.subr.mxu1 %v1186_v33 }
 0x3dc   : > { %1086 = vmatpush3.msra.mxu1 %v710_v49 }
 0x3dd   : > { %1088 = vmatmul.mubr.msk.f32.vlgmr.msra.gmra.mxu1 %vm613_vm2, %v713_v34 }
 0x3e2   : > { %v1176_v52 = vpop.eup %1175 }
 0x49d   : > { %v783_v53 = vpop.f32.mrf.mxu1 }
 0x49e   : > { %v794_v54 = vmul.f32 %v1176_v52, %v783_v53 }
 0x49f   : > { %v1089_v11 = vpop.f32.mrf.mxu1 }
 0x4a0   : > { %v795_v55 = vpack.c.bf16 %v794_v54, %v794_v54 }
 0x4a2   : > { %1107 = vmatmul.mubr.bf16.vlgmr.msra.gmra.mxu0 %v795_v55 }
 0x562   : > { %v895_v56 = vpop.f32.mrf.mxu0 }
 0x563   : > { %v896_v57 = vadd.f32 %v895_v56, %v812_v9 }
 0x564   : > { %v1108_v58 = vpop.f32.mrf.mxu0 }
 0x565   : > { %901 = vst [vmem:[%s281_s12] sm:$0x1] %v896_v57 }
 0x566   : > { %v898_v59 = vpop.f32.mrf.mxu0 }
 0x568   : > { %v1109_v60 = vpop.f32.mrf.mxu0 }
 0x569 PF: > { %s16_s21 = sadd.s32 1, %s1183_s21  }
 0x56a   : > { %p13_p4 = scmp.ge.s32.totalorder %s16_s21, 4  }
 0x56c   :  { %15 = sbr.rel (!%p13_p4) target bundleno = 1 (0x1), region = 80 }

// kernel: trignet_forward.2
= control target key start
LH: loop header
LB: loop body
LE: loop exit
PB: predicated region body
PF: predicated region fallthrough
CT: control target
= control target key end

     0   :  { %s2736_s0 = inlined_call_operand.vmem [shape: f32[3], index: 0, kind: input, shape index: {}]   ;;  %s2737_s1 = inlined_call_operand.vmem [shape: f32[2,4,8,128], index: 1, kind: input, shape index: {}]   ;;  %s2738_s2 = inlined_call_operand.vmem [shape: f32[2,4,8], index: 2, kind: input, shape index: {}]   ;;  %s2739_s3 = inlined_call_operand.vmem [shape: f32[2,16,4,128], index: 3, kind: input, shape index: {}]   ;;  %s2740_s4 = inlined_call_operand.vmem [shape: f32[2,16,4], index: 4, kind: input, shape index: {}]   ;;  %s2741_s5 = inlined_call_operand.vmem [shape: bf16[128,128], index: 5, kind: input, shape index: {}]   ;;  %s2742_s6 = inlined_call_operand.vmem [shape: f32[1,128], index: 6, kind: input, shape index: {}]   ;;  %s2743_s7 = inlined_call_operand.vmem [shape: bf16[4,128,128], index: 7, kind: input, shape index: {}]   ;;  %s2744_s8 = inlined_call_operand.vmem [shape: f32[4,1,128], index: 8, kind: input, shape index: {}]   ;;  %s2745_s9 = inlined_call_operand.hbm [shape: f32[2,4,128], index: 9, kind: output, shape index: {0}]   ;;  %s2746_s10 = inlined_call_operand.vmem [shape: f32[2,4,128], index: 10, kind: output, shape index: {1}]   ;;  %s2747_s11 = inlined_call_operand.vmem [shape: f32[2,16,128], index: 11, kind: output, shape index: {2}]  }
   0x1   :  { %2750 = sst [smem:[#allocation9_spill]] %s2736_s0 }
   0x2   :  { %2751 = sst [smem:[#allocation10_spill]] %s2737_s1 }
   0x3   :  { %2752 = sst [smem:[#allocation11_spill]] %s2738_s2 }
   0x4   :  { %2753 = sst [smem:[#allocation12_spill]] %s2739_s3 }
   0x5   :  { %17 = vsyncpa [#allocation4], 0 }
   0x6   :  { %18 = vsyncpa [#allocation3], 0 }
   0x7   :  { %20 = vsyncpa [#allocation3 + $0x1], 0  ;;  %s2264_s17 = smov 0   ;;  %s2266_s18 = smov 0  }
   0x8   :  { %s2268_s19 = smov 0   ;;  %s2270_s20 = smov 0  }
   0x9 LB: > { %s2285_s21 = sadd.s32 4294967295, %s2198_s20   ;;  %s1743_s22 = sadd.s32 4294967294, %s2198_s20   ;;  %s2198_s20 = sphi %s2270_s20, %s2768_s20   ;;  %s2194_s19 = sphi %s2268_s19, %s2767_s19   ;;  %s2190_s18 = sphi %s2266_s18, %s2766_s18   ;;  %s2186_s17 = sphi %s2264_s17, %s2765_s17  }
   0xa   : > { %s2289_s23 = sadd.s32 1, %s2198_s20   ;;  %s242_s24 = sadd.s32 1, %s2194_s19 }
   0xb   : > { %s239_s25 = ssub.s32 %s2198_s20, %s2289_s23  ;;  %p252_p0 = scmp.ne.s32.totalorder %s2194_s19, %s2190_s18 }
   0xc   : > { %p240_p1 = scmp.eq.s32.totalorder %s239_s25, 0  ;;  %p253_p2 = scmp.eq.s32.totalorder %s2285_s21, 1 }
   0xd   : > { %p258_p3 = scmp.ne.s32.totalorder %s2190_s18, %s2186_s17  ;;  %p259_p4 = scmp.eq.s32.totalorder %s1743_s22, 1 }
   0xe   : > { %s2300_s26 = scalar_select %p240_p1, %s2194_s19, %s242_s24  }
   0xf   : > { %p2302_p5 = por %p253_p2, %p252_p0  ;;  %p2306_p6 = por %p259_p4, %p258_p3 }
  0x10   : > { %2754 = sst [smem:[#allocation8_spill]] %s2300_s26  ;;  %p1744_p7 = scmp.ge.s32.totalorder %s2198_s20, 1 }
  0x11   : > { %p318_p8 = scmp.lt.s32.totalorder %s2198_s20, 3  ;;  %p2025_p9 = scmp.eq.s32.totalorder %s2285_s21, 0 }
  0x12   : > { %s2758_s0 = sld [smem:[#allocation9_spill]] }
  0x13   : > { %p2313_p10 = pnand %p1744_p7, %p318_p8 }
  0x15   : > { %p2017_p11 = pneg %p2313_p10 }
  0x17   : > { %p2018_p12 = pnand %p2025_p9, %p2017_p11 }
  0x18   : > { %s331_s13 = sshll.u32 %s2758_s0, 4  ;;  %s332_s13 = int_to_ptr.vmem [resolvable:$true] %s331_s13 }
  0x19   : > { %s2119_s14 = scalar_lea.vmem %s332_s13, 16  ;;  %p2121_p0 = pneg %p2018_p12 }
  0x1a   : > { %p2120_p13 = scmp.ne.s32.totalorder %s332_s13, %s2119_s14  ;;  %p2127_p3 = scmp.lt.s32.totalorder %s332_s13, %s332_s13 }
  0x1b   : > { %p2128_p4 = scmp.lt.s32.totalorder %s2119_s14, %s2119_s14 }
  0x1c   : > { %p2122_p1 = pnand %p2121_p0, %p2120_p13 }
  0x1d   : > { %p2129_p7 = por %p2128_p4, %p2127_p3 }
  0x1e   : > { %p2123_p2 = pneg %p2122_p1 }
  0x20   : > { %p2130_p8 = pnand %p2129_p7, %p2123_p2 }
  0x22   : > { %2133 = shalt.err (!%p2130_p8)
}
  0x23   : > { %s2200_s15 = smov [#allocation2]   ;;  %387 = sbr.rel (%p2313_p10) target bundleno = 923 (0x39b), region = 56 }
  0x24   : > { %2020 = dma.vmem_to_smem (!%p2018_p12), %s332_s13, 16, %s2200_s15, [#allocation4]  }
  0x28   : > { %2177 = dma.done.wait (%p2025_p9), [#allocation4], 16  }
  0x29   : > { %2179 = vsyncadd (%p2025_p9), [#allocation4], 4294967280 }
  0x2a   : > { %393 = sfence }
  0x2b   : > { %v2063_v0 = vld [vmem:[%s2743_s7 + $0x38] sm:$0xff]   ;;  %v2201_v1 = vmov 0.0   ;;  %p451_p11 = scmp.lt.s32.totalorder %s2285_s21, 1  ;;  %v2064_v2 = vld [vmem:[%s2743_s7 + $0x30] sm:$0xff]   ;;  %vm541_vm0 = vcmask 60416   ;;  %vm2202_vm1 = vmmov 0   ;;  %v485_v3 = vlaneseq }
  0x2c   : > { %1931 = vmatprep.subr.bf16.mxu1 %v2201_v1  ;;  %1911 = vmatprep.subr.bf16.mxu0 %v2201_v1  ;;  %v2065_v4 = vld [vmem:[%s2743_s7 + $0x28] sm:$0xff]   ;;  %s2759_s2 = sld [smem:[#allocation11_spill]]  ;;  %v2066_v7 = vld [vmem:[%s2743_s7 + $0x20] sm:$0xff]   ;;  %v2067_v16 = vld [vmem:[%s2743_s7 + $0x18] sm:$0xff]   ;;  %vm596_vm2 = vcmask 1041409   ;;  %vm599_vm3 = vcmask 1042434  }
  0x2d   : > { %1932 = vmatpush3.bf16.msra.mxu1 %v2063_v0  ;;  %s2341_s29 = scalar_select %p451_p11, %s2285_s21, 1  ;;  %1947 = vmatprep.mubr.msk.bf16.mxu1 %vm2202_vm1, %v2201_v1  ;;  %v2364_v8 = vshrl.u32 %v485_v3, 7  ;;  %v2068_v25 = vld [vmem:[%s2743_s7 + $0x10] sm:$0xff]   ;;  %vm602_vm4 = vcmask 1043459   ;;  %v2069_v31 = vld [vmem:[%s2743_s7 + $0x8] sm:$0xff]   ;;  %v2071_v34 = vld [vmem:[%s2741_s5 + $0x38] sm:$0xff]  }
  0x2e   : > { %1933 = vmatprep.subr.bf16.mxu1 %v2201_v1  ;;  %1927 = vmatprep.mubr.msk.bf16.mxu0 %vm2202_vm1, %v2201_v1  ;;  %s2760_s1 = sld [smem:[#allocation10_spill]]  ;;  %v2070_v37 = vld [vmem:[%s2743_s7] sm:$0xff]   ;;  %v2072_v41 = vld [vmem:[%s2741_s5 + $0x30] sm:$0xff]   ;;  %v2073_v42 = vld [vmem:[%s2741_s5 + $0x28] sm:$0xff]   ;;  %vm1445_vm5 = vcmask 31744   ;;  %vm1332_vm6 = vcmask 1043456  }
  0x2f   : > { %s2748_s30 = sshll.u32 %s2341_s29, 2  ;;  %s1862_s22 = sshll.u32 %s2341_s29, 5  ;;  %v2380_v15 = vsub.s32 2, %v2364_v8  ;;  %v2388_v18 = vsub.s32 0, %v2364_v8  ;;  %v2396_v24 = vsub.s32 3, %v2364_v8  ;;  %v2413_v36 = vsub.s32 1, %v2364_v8  ;;  %1912 = vmatpush3.bf16.msra.mxu0 %v2071_v34 }
  0x30   : > { %1913 = vmatprep.subr.bf16.mxu0 %v2201_v1  ;;  %v2074_v43 = vld [vmem:[%s2741_s5 + $0x20] sm:$0xff]   ;;  %v2075_v44 = vld [vmem:[%s2741_s5 + $0x18] sm:$0xff]   ;;  %v2076_v45 = vld [vmem:[%s2741_s5 + $0x10] sm:$0xff]   ;;  %s1864_s14 = sshll.u32 %s2341_s29, 4  ;;  %s943_s13 = sld [smem:[#allocation2]]  ;;  %vm1529_vm7 = vcmask 1044484  }
  0x31   : > { %1934 = vmatpush3.bf16.msra.mxu1 %v2064_v2  ;;  %v2077_v46 = vld [vmem:[%s2741_s5 + $0x8] sm:$0xff]   ;;  %v2078_v47 = vld [vmem:[%s2741_s5] sm:$0xff]   ;;  %s1830_s15 = sld [smem:[#allocation2 + $0x1]]  ;;  %vm1532_vm8 = vcmask 1045509   ;;  %vm1535_vm9 = vcmask 1046534   ;;  %vm1538_vm10 = vcmask 1047559   ;;  %s478_s26 = scalar_lea.vmem %s2747_s11, %s1864_s14 }
  0x32   : > { %s459_s16 = scalar_lea.vmem %s2759_s2, %s2748_s30  ;;  %1935 = vmatprep.subr.bf16.mxu1 %v2201_v1  ;;  %s469_s30 = scalar_lea.vmem %s2740_s4, %s1864_s14 }
  0x33   : > { %v484_v5 = vld [vmem:[%s459_s16] sm:$0xf]  ;;  %1914 = vmatpush3.bf16.msra.mxu0 %v2072_v41  ;;  %s1863_s16 = sshll.u32 %s2341_s29, 6  ;;  %s2761_s3 = sld [smem:[#allocation12_spill]] }
  0x34   : > { %v542_v6 = vsel %vm541_vm0, %v484_v5, 0.0  ;;  %s455_s12 = scalar_lea.vmem %s2760_s1, %s1862_s22  ;;  %v502_v21 = vrot.slane %v484_v5, %v2380_v15  ;;  %v488_v23 = vrot.slane %v484_v5, %v2388_v18  ;;  %v509_v30 = vrot.slane %v484_v5, %v2396_v24  ;;  %1915 = vmatprep.subr.bf16.mxu0 %v2201_v1  ;;  %s2749_s22 = sand.u32 1, %s2190_s18  }
  0x35   : > { %543 = vadd.xlane.f32.xlu0 %v542_v6  ;;  %1936 = vmatpush3.bf16.msra.mxu1 %v2065_v4  ;;  %v2366_v9 = vld [vmem:[%s455_s12] sm:$0xff]  ;;  %v2368_v10 = vld [vmem:[%s455_s12 + $0x8] sm:$0xff]  ;;  %v2370_v11 = vld [vmem:[%s455_s12 + $0x10] sm:$0xff]  ;;  %v495_v39 = vrot.slane %v484_v5, %v2413_v36  ;;  %s2548_s24 = sshll.u32 %s2749_s22, 2  ;;  %s1859_s14 = sshll.u32 %s2285_s21, 6 }
  0x36   : > { %1937 = vmatprep.subr.bf16.mxu1 %v2201_v1  ;;  %v2373_v12 = vld [vmem:[%s455_s12 + $0x18] sm:$0xff]  ;;  %v697_v13 = vpack.c.bf16 %v2368_v10, %v2368_v10  ;;  %v698_v14 = vpack.c.bf16 %v2370_v11, %v2370_v11  ;;  %v696_v17 = vpack.c.bf16 %v2366_v9, %v2366_v9  ;;  %504 = vbcast.lane.b32.xlu1 %v502_v21, 256  ;;  %s437_s25 = scalar_lea.vmem [#allocation5], %s2548_s24  ;;  %s1579_s12 = scalar_lea.hbm %s2745_s9, %s1859_s14 }
  0x37   : > { %v699_v19 = vpack.c.bf16 %v2373_v12, %v2373_v12  ;;  %1916 = vmatpush3.bf16.msra.mxu0 %v2073_v42  ;;  %s2762_s0 = sand.u32 1, %s2190_s18   ;;  %s2203_s1 = smov [#allocation5]  }
  0x38   : > { %v728_v20 = vunpack.c.l.b16 %v697_v13  ;;  %v729_v22 = vunpack.c.l.b16 %v698_v14  ;;  %v727_v26 = vunpack.c.l.b16 %v696_v17  ;;  %1917 = vmatprep.subr.bf16.mxu0 %v2201_v1  ;;  %s2138_s2 = sshll.u32 %s2203_s1, 4  ;;  %s2139_s2 = int_to_ptr.vmem [resolvable:$false] %s2138_s2 }
  0x39   : > { %1938 = vmatpush3.bf16.msra.mxu1 %v2066_v7  ;;  %v730_v28 = vunpack.c.l.b16 %v699_v19  ;;  %s2604_s22 = scalar_lea.vmem %s2761_s3, %s1863_s16  ;;  %s2140_s3 = scalar_lea.vmem %s2139_s2, 128 }
  0x3a   : > { %1939 = vmatprep.subr.bf16.mxu1 %v2201_v1  ;;  %v731_v27 = vrot.slane %v728_v20, 7  ;;  %v733_v29 = vrot.slane %v729_v22, 6  ;;  %490 = vbcast.lane.b32.xlu1 %v488_v23, 256 }
  0x3b   : > { %v735_v33 = vrot.slane %v730_v28, 5  ;;  %1918 = vmatpush3.bf16.msra.mxu0 %v2074_v43 }
  0x3c   : > { %v732_v32 = vsel %vm596_vm2, %v731_v27, %v727_v26  ;;  %1919 = vmatprep.subr.bf16.mxu0 %v2201_v1 }
  0x3d   : > { %1940 = vmatpush3.bf16.msra.mxu1 %v2067_v16  ;;  %v734_v35 = vsel %vm599_vm3, %v733_v29, %v732_v32 }
  0x3e   : > { %1941 = vmatprep.subr.bf16.mxu1 %v2201_v1  ;;  %511 = vbcast.lane.b32.xlu1 %v509_v30, 256  ;;  %v736_v38 = vsel %vm602_vm4, %v735_v33, %v734_v35 }
  0x3f   : > { %v737_v40 = vpack.c.b16 %v736_v38, %v736_v38  ;;  %1920 = vmatpush3.bf16.msra.mxu0 %v2075_v44 }
  0x40   : > { %1921 = vmatprep.subr.bf16.mxu0 %v2201_v1 }
  0x41   : > { %1942 = vmatpush3.bf16.msra.mxu1 %v2068_v25 }
  0x42   : > { %1943 = vmatprep.subr.bf16.mxu1 %v2201_v1 }
  0x43   : > { %1922 = vmatpush3.bf16.msra.mxu0 %v2076_v45 }
  0x44   : > { %1923 = vmatprep.subr.bf16.mxu0 %v2201_v1 }
  0x45   : > { %1944 = vmatpush3.bf16.msra.mxu1 %v2069_v31 }
  0x46   : > { %1945 = vmatprep.subr.bf16.mxu1 %v2201_v1 }
  0x47   : > { %1924 = vmatpush3.bf16.msra.mxu0 %v2077_v46  ;;  %v2079_v46 = vld [vmem:[%s2743_s7 + $0x78] sm:$0xff]  }
  0x48   : > { %1925 = vmatprep.subr.bf16.mxu0 %v2201_v1 }
  0x49   : > { %1946 = vmatpush3.bf16.msra.mxu1 %v2070_v37 }
  0x4a   : > { %1971 = vmatprep.subr.bf16.mxu1 %v2201_v1 }
  0x4b   : > { %497 = vbcast.lane.b32.xlu0 %v495_v39, 256  ;;  %1926 = vmatpush3.bf16.msra.mxu0 %v2078_v47 }
  0x4c   : > { %1948 = vmatmul.mubr.bf16.vlgmr.msra.gmra.mxu1 %v737_v40  ;;  %1951 = vmatprep.subr.bf16.mxu0 %v2201_v1 }
  0x4d   : > { %1987 = vmatprep.mubr.msk.bf16.mxu1 %vm2202_vm1, %v2201_v1 }
  0xa8   : > { %v505_v48 = vpop.permute.xlu1 %504 }
  0xa9   : > { %v515_v52 = vmul.f32 %v505_v48, %v2370_v11  ;;  %v2080_v48 = vld [vmem:[%s2743_s7 + $0x70] sm:$0xff]  }
  0xab   : > { %v529_v56 = vrot.slane %v515_v52, 4 }
  0xac   : > { %v491_v49 = vpop.permute.xlu1 %490 }
  0xad   : > { %v513_v50 = vmul.f32 %v491_v49, %v2366_v9  ;;  %v530_v59 = vadd.f32 %v529_v56, %v515_v52  ;;  %v2081_v49 = vld [vmem:[%s2743_s7 + $0x68] sm:$0xff]   ;;  %v2084_v52 = vld [vmem:[%s2743_s7 + $0x50] sm:$0xff]  }
  0xaf   : > { %v517_v54 = vrot.slane %v513_v50, 4  ;;  %v531_v0 = vrot.slane %v530_v59, 2 }
  0xb0   : > { %v512_v51 = vpop.permute.xlu1 %511 }
  0xb1   : > { %v516_v53 = vmul.f32 %v512_v51, %v2373_v12  ;;  %v518_v57 = vadd.f32 %v517_v54, %v513_v50  ;;  %v532_v7 = vadd.f32 %v531_v0, %v530_v59  ;;  %v2082_v50 = vld [vmem:[%s2743_s7 + $0x60] sm:$0xff]   ;;  %v2083_v51 = vld [vmem:[%s2743_s7 + $0x58] sm:$0xff]   ;;  %v2088_v0 = vld [vmem:[%s2743_s7 + $0xb0] sm:$0xff]  }
  0xb2   : > { %v2086_v54 = vld [vmem:[%s2743_s7 + $0x40] sm:$0xff]  }
  0xb3   : > { %v535_v55 = vrot.slane %v516_v53, 4  ;;  %v519_v62 = vrot.slane %v518_v57, 2  ;;  %v533_v14 = vrot.slane %v532_v7, 1 }
  0xb5   : > { %v536_v58 = vadd.f32 %v535_v55, %v516_v53  ;;  %v520_v3 = vadd.f32 %v519_v62, %v518_v57  ;;  %v534_v22 = vadd.f32 %v533_v14, %v532_v7  ;;  %v2085_v53 = vld [vmem:[%s2743_s7 + $0x48] sm:$0xff]   ;;  %v1769_v55 = vld [vmem:[%s2744_s8] ss:$0 sm:$0xff] }
  0xb6   : > { %v2094_v7 = vld [vmem:[%s2743_s7 + $0x80] sm:$0xff]  }
  0xb7   : > { %v537_v63 = vrot.slane %v536_v58, 2  ;;  %v521_v9 = vrot.slane %v520_v3, 1 }
  0xb9   : > { %v538_v6 = vadd.f32 %v537_v63, %v536_v58  ;;  %v522_v16 = vadd.f32 %v521_v9, %v520_v3  ;;  %v2087_v63 = vld [vmem:[%s2743_s7 + $0xb8] sm:$0xff]   ;;  %v2090_v3 = vld [vmem:[%s2743_s7 + $0xa0] sm:$0xff]  }
  0xba   : > { %1972 = vmatpush3.bf16.msra.mxu1 %v2087_v63  ;;  %v2095_v9 = vld [vmem:[%s2743_s7 + $0xf8] sm:$0xff]  }
  0xbb   : > { %v539_v13 = vrot.slane %v538_v6, 1  ;;  %1973 = vmatprep.subr.bf16.mxu1 %v2201_v1 }
  0xbd   : > { %v540_v20 = vadd.f32 %v539_v13, %v538_v6  ;;  %v2093_v6 = vld [vmem:[%s2743_s7 + $0x88] sm:$0xff]   ;;  %v1760_v13 = vld [vmem:[%s2742_s6] ss:$0 sm:$0xff] }
  0xbe   : > { %v544_v60 = vpop.xlane.xlu0 %543  ;;  %1974 = vmatpush3.bf16.msra.mxu1 %v2088_v0 }
  0xbf   : > { %v545_v61 = vadd.f32 1e-08, %v544_v60  ;;  %1975 = vmatprep.subr.bf16.mxu1 %v2201_v1 }
  0xc1   : > { %2103 = vrcp.f32 %v545_v61 }
  0xc2   : > { %v498_v2 = vpop.permute.xlu0 %497 }
  0xc3   : > { %v514_v4 = vmul.f32 %v498_v2, %v2368_v10  ;;  %v2089_v2 = vld [vmem:[%s2743_s7 + $0xa8] sm:$0xff]  }
  0xc4   : > { %1976 = vmatpush3.bf16.msra.mxu1 %v2089_v2  ;;  %v1187_v2 = vld [vmem:[%s2604_s22 + $0x4] sm:$0xf] }
  0xc5   : > { %v523_v5 = vrot.slane %v514_v4, 4  ;;  %1977 = vmatprep.subr.bf16.mxu1 %v2201_v1 }
  0xc7   : > { %v524_v11 = vadd.f32 %v523_v5, %v514_v4  ;;  %v2091_v4 = vld [vmem:[%s2743_s7 + $0x98] sm:$0xff]   ;;  %v2092_v5 = vld [vmem:[%s2743_s7 + $0x90] sm:$0xff]  }
  0xc8   : > { %1978 = vmatpush3.bf16.msra.mxu1 %v2090_v3 }
  0xc9   : > { %v525_v12 = vrot.slane %v524_v11, 2  ;;  %1979 = vmatprep.subr.bf16.mxu1 %v2201_v1 }
  0xcb   : > { %v526_v17 = vadd.f32 %v525_v12, %v524_v11  ;;  %v2096_v11 = vld [vmem:[%s2743_s7 + $0xf0] sm:$0xff]   ;;  %v2097_v12 = vld [vmem:[%s2743_s7 + $0xe8] sm:$0xff]  }
  0xcc   : > { %1980 = vmatpush3.bf16.msra.mxu1 %v2091_v4 }
  0xcd   : > { %v527_v19 = vrot.slane %v526_v17, 1  ;;  %1981 = vmatprep.subr.bf16.mxu1 %v2201_v1 }
  0xce   : > { %v2104_v21 = vpop.eup %2103 }
  0xcf   : > { %v556_v23 = vmul.f32 %v2104_v21, %v522_v16  ;;  %v549_v25 = vrot.slane %v2104_v21, 1  ;;  %v528_v26 = vadd.f32 %v527_v19, %v526_v17  ;;  %v551_v27 = vrot.slane %v2104_v21, 3 }
  0xd0   : > { %v550_v28 = vrot.slane %v2104_v21, 2  ;;  %1982 = vmatpush3.bf16.msra.mxu1 %v2092_v5 }
  0xd1   : > { %v560_v10 = vpack.c.bf16 %v556_v23, %v556_v23  ;;  %v557_v29 = vmul.f32 %v549_v25, %v528_v26  ;;  %v559_v30 = vmul.f32 %v551_v27, %v540_v20  ;;  %1983 = vmatprep.subr.bf16.mxu1 %v2201_v1 }
  0xd2   : > { %v558_v31 = vmul.f32 %v550_v28, %v534_v22  ;;  %v1795_v22 = vld [vmem:[%s2744_s8 + $0x1] ss:$0 sm:$0xff] }
  0xd3   : > { %v561_v32 = vpack.c.bf16 %v557_v29, %v557_v29  ;;  %v563_v33 = vpack.c.bf16 %v559_v30, %v559_v30  ;;  %v591_v35 = vunpack.c.l.b16 %v560_v10  ;;  %v2098_v30 = vld [vmem:[%s2743_s7 + $0xe0] sm:$0xff]  }
  0xd4   : > { %v562_v34 = vpack.c.bf16 %v558_v31, %v558_v31  ;;  %1984 = vmatpush3.bf16.msra.mxu1 %v2093_v6  ;;  %v2099_v31 = vld [vmem:[%s2743_s7 + $0xd8] sm:$0xff]  }
  0xd5   : > { %v592_v37 = vunpack.c.l.b16 %v561_v32  ;;  %v594_v38 = vunpack.c.l.b16 %v563_v33  ;;  %1985 = vmatprep.subr.bf16.mxu1 %v2201_v1  ;;  %v1202_v32 = vld [vmem:[%s469_s30] sm:$0xff] }
  0xd6   : > { %v593_v39 = vunpack.c.l.b16 %v562_v34  ;;  %v1446_v33 = vsel %vm1445_vm5, %v1202_v32, 0.0  ;;  %v2100_v34 = vld [vmem:[%s2743_s7 + $0xd0] sm:$0xff]  }
  0xd7   : > { %v595_v40 = vrot.slane %v592_v37, 7  ;;  %v601_v41 = vrot.slane %v594_v38, 5  ;;  %1447 = vadd.xlane.f32.xlu1 %v1446_v33  ;;  %v1203_v37 = vld [vmem:[%s469_s30 + $0x8] sm:$0xff] }
  0xd8   : > { %v598_v42 = vrot.slane %v593_v39, 6  ;;  %1986 = vmatpush3.bf16.msra.mxu1 %v2094_v7  ;;  %v1449_v38 = vsel %vm1445_vm5, %v1203_v37, 0.0  ;;  %v2102_v39 = vld [vmem:[%s2743_s7 + $0xc0] sm:$0xff]  }
  0xd9   : > { %v597_v43 = vsel %vm596_vm2, %v595_v40, %v591_v35  ;;  %v2101_v35 = vld [vmem:[%s2743_s7 + $0xc8] sm:$0xff]   ;;  %1450 = vadd.xlane.f32.xlu0 %v1449_v38  ;;  %v1214_v40 = vrot.slane %v1202_v32, %v2413_v36 }
  0xda   : > { %v600_v44 = vsel %vm599_vm3, %v598_v42, %v597_v43  ;;  %v1277_v42 = vrot.slane %v1203_v37, %v2380_v15  ;;  %v1207_v43 = vrot.slane %v1202_v32, %v2388_v18 }
  0xdb   : > { %v603_v45 = vsel %vm602_vm4, %v601_v41, %v600_v44  ;;  %v1221_v41 = vrot.slane %v1202_v32, %v2380_v15  ;;  %v1270_v44 = vrot.slane %v1203_v37, %v2413_v36  ;;  %v1241_v15 = vsub.s32 5, %v2364_v8 }
  0xdc   : > { %v604_v47 = vpack.c.b16 %v603_v45, %v603_v45  ;;  %v1263_v45 = vrot.slane %v1203_v37, %v2388_v18  ;;  %v1248_v36 = vsub.s32 6, %v2364_v8  ;;  %v1255_v18 = vsub.s32 7, %v2364_v8 }
  0xde   : > { %1928 = vmatmul.mubr.bf16.vlgmr.msra.gmra.mxu0 %v604_v47  ;;  %v1284_v47 = vrot.slane %v1203_v37, %v2396_v24 }
  0xdf   : > { %1952 = vmatpush3.bf16.msra.mxu0 %v2079_v46  ;;  %1967 = vmatprep.mubr.msk.bf16.mxu0 %vm2202_vm1, %v2201_v1  ;;  %v1234_v46 = vsub.s32 4, %v2364_v8 }
  0xe0   : > { %1953 = vmatprep.subr.bf16.mxu0 %v2201_v1 }
  0xe3   : > { %1954 = vmatpush3.bf16.msra.mxu0 %v2080_v48  ;;  %v1235_v48 = vrot.slane %v1202_v32, %v1234_v46 }
  0xe4   : > { %1955 = vmatprep.subr.bf16.mxu0 %v2201_v1 }
  0xe7   : > { %1956 = vmatpush3.bf16.msra.mxu0 %v2081_v49  ;;  %v1291_v49 = vrot.slane %v1203_v37, %v1234_v46  ;;  %v1190_v46 = vld [vmem:[%s2604_s22 + $0x10] sm:$0xf] }
  0xe8   : > { %1957 = vmatprep.subr.bf16.mxu0 %v2201_v1  ;;  %1216 = vbcast.lane.b32.xlu1 %v1214_v40, 256 }
  0xeb   : > { %1958 = vmatpush3.bf16.msra.mxu0 %v2082_v50  ;;  %v1242_v50 = vrot.slane %v1202_v32, %v1241_v15 }
  0xec   : > { %1959 = vmatprep.subr.bf16.mxu0 %v2201_v1  ;;  %1223 = vbcast.lane.b32.xlu1 %v1221_v41, 256 }
  0xef   : > { %1960 = vmatpush3.bf16.msra.mxu0 %v2083_v51  ;;  %1272 = vbcast.lane.b32.xlu0 %v1270_v44, 256  ;;  %v1298_v51 = vrot.slane %v1203_v37, %v1241_v15 }
  0xf0   : > { %1961 = vmatprep.subr.bf16.mxu0 %v2201_v1  ;;  %1279 = vbcast.lane.b32.xlu1 %v1277_v42, 256 }
  0xf3   : > { %1962 = vmatpush3.bf16.msra.mxu0 %v2084_v52  ;;  %1265 = vbcast.lane.b32.xlu0 %v1263_v45, 256  ;;  %v1249_v52 = vrot.slane %v1202_v32, %v1248_v36 }
  0xf4   : > { %1963 = vmatprep.subr.bf16.mxu0 %v2201_v1  ;;  %1209 = vbcast.lane.b32.xlu1 %v1207_v43, 256 }
  0xf7   : > { %1964 = vmatpush3.bf16.msra.mxu0 %v2085_v53  ;;  %1237 = vbcast.lane.b32.xlu0 %v1235_v48, 256  ;;  %v1305_v53 = vrot.slane %v1203_v37, %v1248_v36 }
  0xf8   : > { %1965 = vmatprep.subr.bf16.mxu0 %v2201_v1 }
  0xfb   : > { %1966 = vmatpush3.bf16.msra.mxu0 %v2086_v54  ;;  %1244 = vbcast.lane.b32.xlu0 %v1242_v50, 256  ;;  %v1312_v54 = vrot.slane %v1203_v37, %v1255_v18 }
  0xfc   : > { %1991 = vmatprep.subr.bf16.mxu0 %v2201_v1 }
  0xff   : > { %1251 = vbcast.lane.b32.xlu0 %v1249_v52, 256 }
 0x10c   : > { %v821_v56 = vpop.f32.mrf.mxu1 }
 0x10d   : > { %v822_v57 = vadd.f32 %v1769_v55, %v821_v56  ;;  %v1821_v55 = vld [vmem:[%s2744_s8 + $0x2] ss:$0 sm:$0xff] }
 0x10e   : > { %v1949_v58 = vpop.f32.mrf.mxu1 }
 0x10f   : > { %2105 = vtanh.f32 %v822_v57 }
 0x110   : > { %v824_v59 = vpop.f32.mrf.mxu1 }
 0x112   : > { %v1950_v60 = vpop.f32.mrf.mxu1 }
 0x113   : > { %v944_v60 = vstv %s943_s13  ;;  %s1581_s13 = sshll.u32 %s437_s25, 4  ;;  %s1582_s13 = int_to_ptr.vmem [resolvable:$true] %s1581_s13 }
 0x114   : > { %s2134_s30 = scalar_lea.vmem %s1582_s13, 64  ;;  %p2141_p13 = scmp.lt.s32.totalorder %s1582_s13, %s2139_s2 }
 0x115   : > { %p2135_p9 = scmp.ne.s32.totalorder %s1582_s13, %s2134_s30  ;;  %p2142_p0 = scmp.lt.s32.totalorder %s2140_s3, %s2134_s30 }
 0x117   : > { %p2136_p10 = pnand %p2135_p9, %p2302_p5  ;;  %p2143_p1 = por %p2142_p0, %p2141_p13 }
 0x119   : > { %p2137_p12 = pneg %p2136_p10 }
 0x11b   : > { %p2144_p2 = pnand %p2143_p1, %p2137_p12 }
 0x11c   : > { %v2106_v61 = vpop.eup %2105 }
 0x11d   : > { %v828_v62 = vpack.c.bf16 %v2106_v61, %v2106_v61  ;;  %v1063_v61 = vstv %s1830_s15 }
 0x11f   : > { %1968 = vmatmul.mubr.bf16.vlgmr.msra.gmra.mxu0 %v828_v62 }
 0x120   : > { %2007 = vmatprep.mubr.msk.bf16.mxu0 %vm2202_vm1, %v2201_v1  ;;  %1992 = vmatpush3.bf16.msra.mxu0 %v2095_v9 }
 0x121   : > { %1993 = vmatprep.subr.bf16.mxu0 %v2201_v1 }
 0x124   : > { %1994 = vmatpush3.bf16.msra.mxu0 %v2096_v11  ;;  %v1188_v11 = vld [vmem:[%s2604_s22 + $0x8] sm:$0xf] }
 0x125   : > { %1995 = vmatprep.subr.bf16.mxu0 %v2201_v1 }
 0x128   : > { %1996 = vmatpush3.bf16.msra.mxu0 %v2097_v12 }
 0x129   : > { %1997 = vmatprep.subr.bf16.mxu0 %v2201_v1 }
 0x12c   : > { %1998 = vmatpush3.bf16.msra.mxu0 %v2098_v30 }
 0x12d   : > { %1999 = vmatprep.subr.bf16.mxu0 %v2201_v1 }
 0x130   : > { %2000 = vmatpush3.bf16.msra.mxu0 %v2099_v31  ;;  %v1194_v31 = vld [vmem:[%s2604_s22 + $0x20] sm:$0xf] }
 0x131   : > { %2001 = vmatprep.subr.bf16.mxu0 %v2201_v1 }
 0x134   : > { %2002 = vmatpush3.bf16.msra.mxu0 %v2100_v34 }
 0x135   : > { %2003 = vmatprep.subr.bf16.mxu0 %v2201_v1 }
 0x138   : > { %2004 = vmatpush3.bf16.msra.mxu0 %v2101_v35 }
 0x139   : > { %2005 = vmatprep.subr.bf16.mxu0 %v2201_v1  ;;  %v1228_v1 = vrot.slane %v1202_v32, %v2396_v24  ;;  %v1256_v24 = vrot.slane %v1202_v32, %v1255_v18  ;;  %v1186_v32 = vld [vmem:[%s2604_s22] sm:$0xf] }
 0x13b   : > { %1230 = vbcast.lane.b32.xlu1 %v1228_v1, 256  ;;  %1258 = vbcast.lane.b32.xlu0 %v1256_v24, 256 }
 0x13c   : > { %2006 = vmatpush3.bf16.msra.mxu0 %v2102_v39 }
 0x13f   : > { %1286 = vbcast.lane.b32.xlu1 %v1284_v47, 256  ;;  %v1189_v47 = vld [vmem:[%s2604_s22 + $0xc] sm:$0xf] }
 0x143   : > { %1293 = vbcast.lane.b32.xlu1 %v1291_v49, 256 }
 0x147   : > { %1300 = vbcast.lane.b32.xlu1 %v1298_v51, 256 }
 0x14b   : > { %1307 = vbcast.lane.b32.xlu1 %v1305_v53, 256 }
 0x14f   : > { %1314 = vbcast.lane.b32.xlu1 %v1312_v54, 256 }
 0x160   : > { %v1448_v62 = vpop.xlane.xlu1 %1447 }
 0x161   : > { %v1452_v0 = vadd.f32 1e-08, %v1448_v62 }
 0x164   : > { %v1217_v6 = vpop.permute.xlu1 %1216 }
 0x165   : > { %v1317_v9 = vmul.f32 %v1217_v6, %v1187_v2 }
 0x167   : > { %v1340_v12 = vsel %vm1332_vm6, %v1317_v9, 0.0 }
 0x19e   : > { %v688_v14 = vpop.f32.mrf.mxu0 }
 0x19f   : > { %v689_v16 = vadd.f32 %v1760_v13, %v688_v14  ;;  %v1341_v13 = vrot.slane %v1340_v12, 4  ;;  %v1451_v14 = vpop.xlane.xlu0 %1450 }
 0x1a0   : > { %v1929_v17 = vpop.f32.mrf.mxu0 }
 0x1a1   : > { %2107 = vtanh.f32 %v689_v16  ;;  %v1224_v16 = vpop.permute.xlu1 %1223  ;;  %v1453_v17 = vadd.f32 1e-08, %v1451_v14 }
 0x1a2   : > { %v691_v19 = vpop.f32.mrf.mxu0 }
 0x1a3   : > { %v1318_v19 = vmul.f32 %v1224_v16, %v1188_v11 }
 0x1a4   : > { %v1930_v20 = vpop.f32.mrf.mxu0 }
 0x1a5   : > { %v1342_v20 = vadd.f32 %v1341_v13, %v1340_v12 }
 0x1ae   : > { %v2108_v21 = vpop.eup %2107 }
 0x1af   : > { %695 = vst [vmem:[%s437_s25] sm:$0xf] %v2108_v21  ;;  %v1195_v21 = vld [vmem:[%s2604_s22 + $0x24] sm:$0xf] }
 0x1df   : > { %v936_v23 = vpop.f32.mrf.mxu0 }
 0x1e0   : > { %v937_v25 = vadd.f32 %v1795_v22, %v936_v23  ;;  %v1196_v22 = vld [vmem:[%s2604_s22 + $0x28] sm:$0xf]  ;;  %v1347_v23 = vsel %vm1332_vm6, %v1318_v19, 0.0 }
 0x1e1   : > { %v1969_v26 = vpop.f32.mrf.mxu0 }
 0x1e2   : > { %2109 = vtanh.f32 %v937_v25  ;;  %v1343_v25 = vrot.slane %v1342_v20, 2  ;;  %v1348_v26 = vrot.slane %v1347_v23, 4 }
 0x1e3   : > { %v939_v27 = vpop.f32.mrf.mxu0 }
 0x1e4   : > { %v1273_v27 = vpop.permute.xlu0 %1272  ;;  %v1349_v30 = vadd.f32 %v1348_v26, %v1347_v23  ;;  %v1344_v35 = vadd.f32 %v1343_v25, %v1342_v20 }
 0x1e5   : > { %v1970_v28 = vpop.f32.mrf.mxu0 }
 0x1e6   : > { %v1280_v28 = vpop.permute.xlu1 %1279  ;;  %v1350_v37 = vrot.slane %v1349_v30, 2  ;;  %v1345_v50 = vrot.slane %v1344_v35, 1 }
 0x1e8   : > { %v1266_v40 = vpop.permute.xlu0 %1265  ;;  %v1351_v44 = vadd.f32 %v1350_v37, %v1349_v30  ;;  %v1346_v11 = vadd.f32 %v1345_v50, %v1344_v35 }
 0x1e9   : > { %v1324_v42 = vmul.f32 %v1266_v40, %v1194_v31 }
 0x1ea   : > { %v1210_v41 = vpop.permute.xlu1 %1209  ;;  %v1352_v36 = vrot.slane %v1351_v44, 1 }
 0x1eb   : > { %v1316_v43 = vmul.f32 %v1210_v41, %v1186_v32  ;;  %v1389_v15 = vsel %vm1332_vm6, %v1324_v42, 0.0  ;;  %v1197_v32 = vld [vmem:[%s2604_s22 + $0x2c] sm:$0xf] }
 0x1ec   : > { %v1238_v18 = vpop.permute.xlu0 %1237  ;;  %v1390_v24 = vrot.slane %v1389_v15, 4  ;;  %v1353_v12 = vadd.f32 %v1352_v36, %v1351_v44 }
 0x1ed   : > { %v1333_v49 = vsel %vm1332_vm6, %v1316_v43, 0.0 }
 0x1ee   : > { %v1231_v53 = vpop.permute.xlu1 %1230  ;;  %v1334_v54 = vrot.slane %v1333_v49, 4 }
 0x1ef   : > { %v2556_v10 = vpop.eup %2109 }
 0x1f0   : > { %v947_v29 = vpack.c.bf16 %v2556_v10, %v2556_v10  ;;  %v945_v3 = vmul.f32 %v2556_v10, %v944_v60  ;;  %v1325_v10 = vmul.f32 %v1273_v27, %v1195_v21  ;;  %v1391_v60 = vadd.f32 %v1390_v24, %v1389_v15  ;;  %v1245_v6 = vpop.permute.xlu0 %1244  ;;  %v1198_v24 = vld [vmem:[%s2604_s22 + $0x30] sm:$0xf] }
 0x1f2   : > { %1988 = vmatmul.mubr.bf16.vlgmr.msra.gmra.mxu1 %v947_v29  ;;  %v1326_v29 = vmul.f32 %v1280_v28, %v1196_v22  ;;  %v1396_v33 = vsel %vm1332_vm6, %v1325_v10, 0.0  ;;  %v1287_v9 = vpop.permute.xlu1 %1286  ;;  %v1392_v19 = vrot.slane %v1391_v60, 2 }
 0x1f3   : > { %v1397_v38 = vrot.slane %v1396_v33, 4 }
 0x1f4   : > { %v1403_v34 = vsel %vm1332_vm6, %v1326_v29, 0.0  ;;  %v1393_v37 = vadd.f32 %v1392_v19, %v1391_v60 }
 0x1f5   : > { %v1404_v39 = vrot.slane %v1403_v34, 4  ;;  %v1398_v1 = vadd.f32 %v1397_v38, %v1396_v33  ;;  %v1192_v33 = vld [vmem:[%s2604_s22 + $0x18] sm:$0xf] }
 0x1f6   : > { %v1294_v28 = vpop.permute.xlu1 %1293 }
 0x1f7   : > { %v1405_v45 = vadd.f32 %v1404_v39, %v1403_v34  ;;  %v1399_v51 = vrot.slane %v1398_v1, 2  ;;  %v1252_v34 = vpop.permute.xlu0 %1251 }
 0x1f9   : > { %v1406_v52 = vrot.slane %v1405_v45, 2 }
 0x1fa   : > { %v1301_v36 = vpop.permute.xlu1 %1300 }
 0x1fe   : > { %v1308_v19 = vpop.permute.xlu1 %1307 }
 0x2b2   : > { %v1055_v56 = vpop.f32.mrf.mxu1 }
 0x2b3   : > { %v1056_v57 = vadd.f32 %v1821_v55, %v1055_v56  ;;  %v1320_v55 = vmul.f32 %v1238_v18, %v1190_v46  ;;  %v1319_v56 = vmul.f32 %v1231_v53, %v1189_v47  ;;  %v1322_v46 = vmul.f32 %v1252_v34, %v1192_v33 }
 0x2b4   : > { %v1989_v58 = vpop.f32.mrf.mxu1 }
 0x2b5   : > { %2111 = vtanh.f32 %v1056_v57  ;;  %v1400_v58 = vadd.f32 %v1399_v51, %v1398_v1  ;;  %v1361_v62 = vsel %vm1332_vm6, %v1320_v55, 0.0  ;;  %v1394_v51 = vrot.slane %v1393_v37, 1 }
 0x2b6   : > { %v1058_v59 = vpop.f32.mrf.mxu1  ;;  %2113 = vrcp.f32 %v1452_v0  ;;  %v1375_v53 = vsel %vm1332_vm6, %v1322_v46, 0.0 }
 0x2b7   : > { %2115 = vrcp.f32 %v1453_v17  ;;  %v1407_v59 = vadd.f32 %v1406_v52, %v1405_v45  ;;  %v1401_v0 = vrot.slane %v1400_v58, 1  ;;  %v1327_v45 = vmul.f32 %v1287_v9, %v1197_v32 }
 0x2b8   : > { %v1990_v8 = vpop.f32.mrf.mxu1  ;;  %v1328_v9 = vmul.f32 %v1294_v28, %v1198_v24 }
 0x2b9   : > { %v1408_v2 = vrot.slane %v1407_v59, 1  ;;  %v1402_v16 = vadd.f32 %v1401_v0, %v1400_v58  ;;  %v1410_v18 = vsel %vm1332_vm6, %v1327_v45, 0.0  ;;  %v1193_v58 = vld [vmem:[%s2604_s22 + $0x1c] sm:$0xf] }
 0x2bb   : > { %v1409_v21 = vadd.f32 %v1408_v2, %v1407_v59  ;;  %v1259_v59 = vpop.permute.xlu0 %1258 }
 0x2c2   : > { %v2112_v63 = vpop.eup %2111 }
 0x2c3   : > { %v1064_v4 = vmul.f32 %v2112_v63, %v1063_v61  ;;  %v1066_v5 = vpack.c.bf16 %v2112_v63, %v2112_v63  ;;  %v2621_v48 = vpop.eup %2113  ;;  %v1335_v61 = vadd.f32 %v1334_v54, %v1333_v49 }
 0x2c4   : > { %v1460_v57 = vrot.slane %v2621_v48, 1  ;;  %v1461_v8 = vrot.slane %v2621_v48, 2  ;;  %v2628_v63 = vpop.eup %2115  ;;  %v1463_v27 = vrot.slane %v2621_v48, 4  ;;  %v1462_v49 = vrot.slane %v2621_v48, 3 }
 0x2c5   : > { %v2608_v7 = vadd.f32 %v1064_v4, %v945_v3  ;;  %2008 = vmatmul.mubr.bf16.vlgmr.msra.gmra.mxu0 %v1066_v5  ;;  %v1362_v3 = vrot.slane %v1361_v62, 4  ;;  %v1354_v4 = vsel %vm1332_vm6, %v1319_v56, 0.0  ;;  %v1191_v5 = vld [vmem:[%s2604_s22 + $0x14] sm:$0xf]  ;;  %v1467_v13 = vrot.slane %v2628_v63, 1 }
 0x2c6   : > { %v1336_v14 = vrot.slane %v1335_v61, 2  ;;  %v1468_v17 = vrot.slane %v2628_v63, 2  ;;  %v1355_v23 = vrot.slane %v1354_v4, 4  ;;  %v1321_v25 = vmul.f32 %v1245_v6, %v1191_v5 }
 0x2c7   : > { %v1363_v20 = vadd.f32 %v1362_v3, %v1361_v62  ;;  %v1491_v10 = vmul.f32 %v1460_v57, %v1346_v11  ;;  %v1492_v35 = vmul.f32 %v1461_v8, %v1353_v12  ;;  %v2638_v40 = vmul.f32 %v1467_v13, %v1402_v16 }
 0x2c8   : > { %v1337_v22 = vadd.f32 %v1336_v14, %v1335_v61  ;;  %v1356_v30 = vadd.f32 %v1355_v23, %v1354_v4  ;;  %v1368_v31 = vsel %vm1332_vm6, %v1321_v25, 0.0  ;;  %v2640_v41 = vmul.f32 %v1468_v17, %v1409_v21  ;;  %v1199_v17 = vld [vmem:[%s2604_s22 + $0x34] sm:$0xf] }
 0x2c9   : > { %v1364_v26 = vrot.slane %v1363_v20, 2  ;;  %v1369_v39 = vrot.slane %v1368_v31, 4  ;;  %v1522_v47 = vrot.slane %v1491_v10, 7  ;;  %v1524_v54 = vrot.slane %v1492_v35, 6 }
 0x2ca   : > { %v1338_v29 = vrot.slane %v1337_v22, 1  ;;  %v1357_v43 = vrot.slane %v1356_v30, 2  ;;  %v1411_v57 = vrot.slane %v1410_v18, 4  ;;  %v1540_v8 = vrot.slane %v2638_v40, 7 }
 0x2cb   : > { %v1365_v38 = vadd.f32 %v1364_v26, %v1363_v20  ;;  %v1370_v1 = vadd.f32 %v1369_v39, %v1368_v31  ;;  %v1542_v60 = vrot.slane %v2640_v41, 6  ;;  %v1464_v62 = vrot.slane %v2621_v48, 5 }
 0x2cc   : > { %v1339_v42 = vadd.f32 %v1338_v29, %v1337_v22  ;;  %v1358_v50 = vadd.f32 %v1357_v43, %v1356_v30  ;;  %v1412_v3 = vadd.f32 %v1411_v57, %v1410_v18  ;;  %v1376_v4 = vrot.slane %v1375_v53, 4 }
 0x2cd   : > { %v1366_v44 = vrot.slane %v1365_v38, 1  ;;  %v1371_v52 = vrot.slane %v1370_v1, 2  ;;  %v1395_v5 = vadd.f32 %v1394_v51, %v1393_v37  ;;  %v1323_v11 = vmul.f32 %v1259_v59, %v1193_v58  ;;  %v1200_v37 = vld [vmem:[%s2604_s22 + $0x38] sm:$0xf] }
 0x2ce   : > { %v1490_v15 = vmul.f32 %v2621_v48, %v1339_v42  ;;  %v1359_v56 = vrot.slane %v1358_v50, 1  ;;  %v1413_v14 = vrot.slane %v1412_v3, 2  ;;  %v1377_v16 = vadd.f32 %v1376_v4, %v1375_v53 }
 0x2cf   : > { %v1367_v55 = vadd.f32 %v1366_v44, %v1365_v38  ;;  %v1372_v61 = vadd.f32 %v1371_v52, %v1370_v1  ;;  %v1417_v22 = vsel %vm1332_vm6, %v1328_v9, 0.0  ;;  %v1382_v23 = vsel %vm1332_vm6, %v1323_v11, 0.0 }
 0x2d0   : > { %v1523_v0 = vsel %vm596_vm2, %v1522_v47, %v1490_v15  ;;  %v1360_v2 = vadd.f32 %v1359_v56, %v1358_v50  ;;  %v1414_v26 = vadd.f32 %v1413_v14, %v1412_v3  ;;  %v1378_v10 = vrot.slane %v1377_v16, 2  ;;  %v1201_v47 = vld [vmem:[%s2604_s22 + $0x3c] sm:$0xf]  ;;  %v1315_v15 = vpop.permute.xlu1 %1314  ;;  %s1559_s22 = scalar_lea.sflag [#allocation3], %s2762_s0 }
 0x2d1   : > { %v1373_v6 = vrot.slane %v1372_v61, 1  ;;  %v1494_v12 = vmul.f32 %v1463_v27, %v1367_v55  ;;  %v1525_v20 = vsel %vm599_vm3, %v1524_v54, %v1523_v0  ;;  %v1418_v28 = vrot.slane %v1417_v22, 4 }
 0x2d2   : > { %v1493_v13 = vmul.f32 %v1462_v49, %v1360_v2  ;;  %v1469_v27 = vrot.slane %v2628_v63, 3  ;;  %v1465_v29 = vrot.slane %v2621_v48, 6  ;;  %v1383_v30 = vrot.slane %v1382_v23, 4 }
 0x2d3   : > { %v1374_v21 = vadd.f32 %v1373_v6, %v1372_v61  ;;  %v1329_v31 = vmul.f32 %v1301_v36, %v1199_v17  ;;  %v1528_v32 = vrot.slane %v1494_v12, 4  ;;  %v1415_v33 = vrot.slane %v1414_v26, 1 }
 0x2d4   : > { %v1526_v25 = vrot.slane %v1493_v13, 5  ;;  %v1379_v34 = vadd.f32 %v1378_v10, %v1377_v16  ;;  %v1419_v35 = vadd.f32 %v1418_v28, %v1417_v22  ;;  %v1384_v42 = vadd.f32 %v1383_v30, %v1382_v23 }
 0x2d5   : > { %v1495_v39 = vmul.f32 %v1464_v62, %v1374_v21  ;;  %v1424_v43 = vsel %vm1332_vm6, %v1329_v31, 0.0  ;;  %v1416_v44 = vadd.f32 %v1415_v33, %v1414_v26  ;;  %v1498_v49 = vmul.f32 %v2628_v63, %v1395_v5 }
 0x2d6   : > { %v1527_v38 = vsel %vm602_vm4, %v1526_v25, %v1525_v20  ;;  %v1380_v1 = vrot.slane %v1379_v34, 1  ;;  %v1420_v45 = vrot.slane %v1419_v35, 2  ;;  %v1425_v46 = vrot.slane %v1424_v43, 4 }
 0x2d7   : > { %v1470_v50 = vrot.slane %v2628_v63, 4  ;;  %v1385_v36 = vrot.slane %v1384_v42, 2  ;;  %v1330_v51 = vmul.f32 %v1308_v19, %v1200_v37  ;;  %v1530_v52 = vsel %vm1529_vm7, %v1528_v32, %v1527_v38 }
 0x2d8   : > { %v1381_v18 = vadd.f32 %v1380_v1, %v1379_v34  ;;  %v1421_v53 = vadd.f32 %v1420_v45, %v1419_v35  ;;  %v1426_v24 = vadd.f32 %v1425_v46, %v1424_v43  ;;  %v1531_v54 = vrot.slane %v1495_v39, 3 }
 0x2d9   : > { %v1386_v55 = vadd.f32 %v1385_v36, %v1384_v42  ;;  %v1431_v56 = vsel %vm1332_vm6, %v1330_v51, 0.0  ;;  %v1331_v57 = vmul.f32 %v1315_v15, %v1201_v47  ;;  %v1501_v58 = vmul.f32 %v1469_v27, %v1416_v44 }
 0x2da   : > { %v1496_v59 = vmul.f32 %v1465_v29, %v1381_v18  ;;  %v1422_v61 = vrot.slane %v1421_v53, 1  ;;  %v1427_v62 = vrot.slane %v1426_v24, 2  ;;  %v1466_v2 = vrot.slane %v2621_v48, 7 }
 0x2db   : > { %v1387_v0 = vrot.slane %v1386_v55, 1  ;;  %v1432_v3 = vrot.slane %v1431_v56, 4  ;;  %v1438_v4 = vsel %vm1332_vm6, %v1331_v57, 0.0  ;;  %v1541_v5 = vsel %vm596_vm2, %v1540_v8, %v1498_v49 }
 0x2dc   : > { %v1534_v6 = vrot.slane %v1496_v59, 2  ;;  %v1423_v9 = vadd.f32 %v1422_v61, %v1421_v53  ;;  %v1428_v11 = vadd.f32 %v1427_v62, %v1426_v24  ;;  %v1533_v12 = vsel %vm1532_vm8, %v1531_v54, %v1530_v52 }
 0x2dd   : > { %v1388_v13 = vadd.f32 %v1387_v0, %v1386_v55  ;;  %v1433_v14 = vadd.f32 %v1432_v3, %v1431_v56  ;;  %v1439_v16 = vrot.slane %v1438_v4, 4  ;;  %v1544_v17 = vrot.slane %v1501_v58, 5 }
 0x2de   : > { %v1502_v19 = vmul.f32 %v1470_v50, %v1423_v9  ;;  %v1471_v48 = vrot.slane %v2628_v63, 5  ;;  %v1429_v20 = vrot.slane %v1428_v11, 1  ;;  %v1543_v40 = vsel %vm599_vm3, %v1542_v60, %v1541_v5 }
 0x2df   : > { %v1497_v21 = vmul.f32 %v1466_v2, %v1388_v13  ;;  %v1434_v8 = vrot.slane %v1433_v14, 2  ;;  %v1440_v22 = vadd.f32 %v1439_v16, %v1438_v4  ;;  %v1536_v23 = vsel %vm1535_vm9, %v1534_v6, %v1533_v12 }
 0x2e0   : > { %v1430_v25 = vadd.f32 %v1429_v20, %v1428_v11  ;;  %v1546_v26 = vrot.slane %v1502_v19, 4  ;;  %v1545_v41 = vsel %vm602_vm4, %v1544_v17, %v1543_v40  ;;  %v1472_v30 = vrot.slane %v2628_v63, 6 }
 0x2e1   : > { %v1537_v10 = vrot.slane %v1497_v21, 1  ;;  %v1435_v28 = vadd.f32 %v1434_v8, %v1433_v14  ;;  %v1441_v27 = vrot.slane %v1440_v22, 2  ;;  %v1473_v37 = vrot.slane %v2628_v63, 7 }
 0x2e2   : > { %v1503_v29 = vmul.f32 %v1471_v48, %v1430_v25  ;;  %v1547_v34 = vsel %vm1529_vm7, %v1546_v26, %v1545_v41 }
 0x2e3   : > { %v1539_v60 = vsel %vm1538_vm10, %v1537_v10, %v1536_v23  ;;  %v1436_v31 = vrot.slane %v1435_v28, 1  ;;  %v1442_v32 = vadd.f32 %v1441_v27, %v1440_v22 }
 0x2e4   : > { %1556 = vst [vmem:[%s478_s26] sm:$0xff] %v1539_v60  ;;  %v1548_v33 = vrot.slane %v1503_v29, 3 }
 0x2e5   : > { %v1437_v35 = vadd.f32 %v1436_v31, %v1435_v28  ;;  %v1443_v38 = vrot.slane %v1442_v32, 1 }
 0x2e6   : > { %v1549_v43 = vsel %vm1532_vm8, %v1548_v33, %v1547_v34 }
 0x2e7   : > { %v1504_v39 = vmul.f32 %v1472_v30, %v1437_v35  ;;  %v1444_v42 = vadd.f32 %v1443_v38, %v1442_v32 }
 0x2e9   : > { %v1550_v44 = vrot.slane %v1504_v39, 2  ;;  %v1505_v1 = vmul.f32 %v1473_v37, %v1444_v42 }
 0x2eb   : > { %v1551_v45 = vsel %vm1535_vm9, %v1550_v44, %v1549_v43  ;;  %v1552_v46 = vrot.slane %v1505_v1, 1 }
 0x2ed   : > { %v1553_v47 = vsel %vm1538_vm10, %v1552_v46, %v1551_v45 }
 0x2ee   : > { %1557 = vst [vmem:[%s478_s26 + $0x8] sm:$0xff] %v1553_v47 }
 0x2ef   : > { %2147 = shalt.err (!%p2144_p2)
}
 0x2f0   : > { %s2148_s21 = scalar_lea.hbm %s1579_s12, 64  ;;  %s2152_s26 = scalar_lea.hbm %s2745_s9, 128 }
 0x2f1   : > { %p2149_p3 = scmp.ne.s32.totalorder %s1579_s12, %s2148_s21  ;;  %p2153_p8 = scmp.lt.s32.totalorder %s1579_s12, %s2745_s9 }
 0x2f2   : > { %p2154_p11 = scmp.lt.s32.totalorder %s2152_s26, %s2148_s21 }
 0x2f3   : > { %p2150_p4 = pnand %p2149_p3, %p2302_p5 }
 0x2f4   : > { %p2155_p9 = por %p2154_p11, %p2153_p8 }
 0x2f5   : > { %p2151_p7 = pneg %p2150_p4 }
 0x2f7   : > { %p2156_p10 = pnand %p2155_p9, %p2151_p7 }
 0x2f9   : > { %2159 = shalt.err (!%p2156_p10)
}
 0x2fa   : > { %2015 = dma.vmem_to_hbm [thread:$0]  (%p2302_p5), %s1582_s13, 64, %s1579_s12, %s1559_s22   ;;  %v1848_v63 = vld [vmem:[%s2744_s8 + $0x3] ss:$0 sm:$0xff] }
 0x2fb   : > { %s1857_s3 = sld [smem:[#allocation2 + $0x2]]  ;;  %s2763_s16 = sshll.u32 %s2341_s29, 2 }
 0x2fc   : > { %s473_s27 = scalar_lea.vmem %s2746_s10, %s2763_s16 }
 0x301   : > { %v1182_v52 = vstv %s1857_s3 }
 0x385   : > { %v1174_v15 = vpop.f32.mrf.mxu0 }
 0x386   : > { %v1175_v49 = vadd.f32 %v1848_v63, %v1174_v15 }
 0x387   : > { %v2009_v50 = vpop.f32.mrf.mxu0 }
 0x388   : > { %2117 = vtanh.f32 %v1175_v49 }
 0x389   : > { %v1177_v36 = vpop.f32.mrf.mxu0 }
 0x38b   : > { %v2010_v51 = vpop.f32.mrf.mxu0 }
 0x395   : > { %v2118_v18 = vpop.eup %2117 }
 0x396   : > { %v1183_v53 = vmul.f32 %v2118_v18, %v1182_v52 }
 0x398   : > { %v1184_v24 = vadd.f32 %v1183_v53, %v2608_v7 }
 0x39a   : > { %1185 = vst [vmem:[%s473_s27] sm:$0xf] %v1184_v24 }
 0x39b PF: > { %p2027_p5 = scmp.ge.s32.totalorder %s2198_s20, 2  ;;  %s1599_s13 = sand.u32 1, %s2186_s17  }
 0x39c   : > { %s1600_s12 = scalar_lea.sflag [#allocation3], %s1599_s13 }
 0x39d   : > { %p2022_p12 = pnand %p2027_p5, %p2306_p6 }
 0x39f   : > { %p2023_p13 = pneg %p2022_p12 }
 0x3a1   : > { %2181 = dma.done.wait (%p2023_p13), %s1600_s12, 64  }
 0x3a2   : > { %2183 = vsyncadd (%p2023_p13), %s1600_s12, 4294967232  ;;  %s2764_s29 = sld [smem:[#allocation8_spill]]  ;;  %p23_p0 = scmp.ge.s32.totalorder %s2289_s23, 4  }
 0x3a3   : > { %s2765_s17 = smov %s2190_s18  ;;  %s2766_s18 = smov %s2194_s19 }
 0x3a4   : > { %s2768_s20 = smov %s2289_s23  ;;  %25 = sbr.rel (!%p23_p0) target bundleno = 9 (0x9), region = 135 }
 0x3a8   : > { %s2767_s19 = smov %s2764_s29 }
 0x3a9   :  { %1620 = vsyncpa [#allocation3], 1 }
 0x3aa   :  { %1622 = vsyncpa [#allocation3 + $0x1], 1 }
 0x3ab   :  { %1623 = vsyncpa [#allocation4], 1 }
 0x3ac   :  { %1625 = vsyncpa [#allocation4 + $0x1], 1 }

</bundles_post_ra>
